<compile_context>
chip_gen: v6e
topology: v6e:2x2x1
jax: 0.10.0
libtpu: 0.0.40
codegen_flags: <defaults>
</compile_context>

<pallas_src>
import functools

import jax
import jax.numpy as jnp
from jax.experimental import pallas as pl
from jax.experimental.pallas import tpu as pltpu


def merger_kernel(x_ref, wslab_ref, w2_ref, bslab_ref, head_ref, o_ref,
                  *, emb_dim, num_heads, hidden_dim, num_layers):
    E = emb_dim
    hd = E // num_heads
    eps = 1e-5                                  # PyTorch nn.LayerNorm default
    n = x_ref.shape[0]

    # static lane offsets inside the packed parameter slabs
    QKV0, WO0, W10 = 0, 3 * E, 4 * E                              # weight slab layout
    BQKV0, BO0, B10, B20 = 0, 3 * E, 4 * E, 4 * E + hidden_dim    # bias slab layout

    def norm(v):
        # LayerNorm with the affine (gamma, beta) folded into the next matmul at prep time
        mu = jnp.mean(v, axis=-1, keepdims=True)
        vc = v - mu
        var = jnp.mean(vc * vc, axis=-1, keepdims=True)
        return vc * jax.lax.rsqrt(var + eps)

    def heads(a):                                # (N, E) -> (H, N, hd): one reshape + one transpose
        return a.reshape(n, num_heads, hd).transpose(1, 0, 2)

    x = x_ref[...]                               # (N, E); concat done in the wrapper

    for l in range(num_layers):                  # static unroll over the 2 encoder layers
        wqkv = wslab_ref[l, :, QKV0:QKV0 + 3 * E]         # (E, 3E) LN1 affine + 1/sqrt(hd) folded
        wo   = wslab_ref[l, :, WO0:WO0 + E]               # (E, E)
        w1   = wslab_ref[l, :, W10:W10 + hidden_dim]      # (E, hidden) LN2 affine folded
        w2   = w2_ref[l]                                  # (hidden, E)
        bqkv = bslab_ref[l, :, BQKV0:BQKV0 + 3 * E]       # (1, 3E)
        bo   = bslab_ref[l, :, BO0:BO0 + E]               # (1, E)
        b1   = bslab_ref[l, :, B10:B10 + hidden_dim]      # (1, hidden)
        b2   = bslab_ref[l, :, B20:B20 + E]               # (1, E)

        # ---------- pre-LN multi-head self-attention ----------
        qkv = jnp.dot(norm(x), wqkv, preferred_element_type=jnp.float32) + bqkv   # (N, 3E)
        q = heads(qkv[:, 0 * E:1 * E])                     # (H, N, hd), scale pre-folded
        k = heads(qkv[:, 1 * E:2 * E])
        v = heads(qkv[:, 2 * E:3 * E])
        s = jnp.einsum('hqd,hkd->hqk', q, k, preferred_element_type=jnp.float32)  # (H, N, N)
        s = s - jnp.max(s, axis=-1, keepdims=True)
        p = jnp.exp(s)
        p = p * pl.reciprocal(jnp.sum(p, axis=-1, keepdims=True), approx=True)
        o = jnp.einsum('hqk,hkd->qhd', p, v, preferred_element_type=jnp.float32)  # (N, H, hd)
        o = o.reshape(n, E)                                                        # merge heads
        x = x + jnp.dot(o, wo, preferred_element_type=jnp.float32) + bo

        # ---------- pre-LN feed-forward ----------
        h1 = jnp.maximum(jnp.dot(norm(x), w1, preferred_element_type=jnp.float32) + b1, 0.0)
        x = x + jnp.dot(h1, w2, preferred_element_type=jnp.float32) + b2

    # ---------- Merger head: Dropout -> Linear -> Sigmoid ----------
    # TODO(synk): nn.Dropout(p=0.5) is treated as identity (inference / eval mode).
    w_out = head_ref[:E, :]
    b_out = head_ref[E:E + 1, :]
    logits = jnp.dot(x, w_out, preferred_element_type=jnp.float32) + b_out
    # exact sigmoid (exp on the EUP slot + one VPU divide on an (N, OUT) tile); keeps the
    # approx-reciprocal error budget confined to the softmax normalization above.
    o_ref[...] = 1.0 / (1.0 + jnp.exp(-logits))


def merger_forward(model_emb, text_emb, prep, *, num_heads, output_dim):
    """model_emb/text_emb: (N, d) like the torch module, or (B, N, d) to amortize the
    launch/DMA overhead over B independent Merger problems (one grid step each)."""
    unbatched = model_emb.ndim == 2
    if unbatched:
        model_emb, text_emb = model_emb[None], text_emb[None]

    # torch.concat((model_emb, text_emb), dim=1) done here in XLA: one fused copy
    # instead of an in-kernel lane-axis concat + two separate input DMAs.
    x = jnp.concatenate([model_emb, text_emb], axis=-1).astype(jnp.float32)
    batch, n_rows, emb_dim = x.shape
    num_layers = prep["wslab"].shape[0]
    hidden_dim = prep["w2slab"].shape[1]

    kernel = functools.partial(merger_kernel, emb_dim=emb_dim, num_heads=num_heads,
                               hidden_dim=hidden_dim, num_layers=num_layers)

    out = pl.pallas_call(
        kernel,
        out_shape=jax.ShapeDtypeStruct((batch, n_rows, output_dim), jnp.float32),
        grid=(batch,),
        in_specs=[
            pl.BlockSpec((None, n_rows, emb_dim), lambda b: (b, 0, 0)),   # per-problem rows
            pl.BlockSpec(prep["wslab"].shape, lambda b: (0, 0, 0)),       # weights resident
            pl.BlockSpec(prep["w2slab"].shape, lambda b: (0, 0, 0)),
            pl.BlockSpec(prep["bslab"].shape, lambda b: (0, 0, 0)),
            pl.BlockSpec(prep["head"].shape, lambda b: (0, 0)),
        ],
        out_specs=pl.BlockSpec((None, n_rows, output_dim), lambda b: (b, 0, 0)),
        compiler_params=pltpu.CompilerParams(
            dimension_semantics=("parallel",)),   # v7x: shard the batch across 2 TCs
    )(x, prep["wslab"], prep["w2slab"], prep["bslab"], prep["head"])
    return out[0] if unbatched else out


# ---------------- deterministic synthetic parameters (raw, torch-style) ----------------
def init_params(key, emb_dim, hidden_dim, num_layers, output_dim):
    def w(k, shape, scale=0.05):
        return (scale * jax.random.normal(k, shape)).astype(jnp.float32)

    layers = []
    for l in range(num_layers):
        ks = jax.random.split(jax.random.fold_in(key, l), 12)
        layers.append(dict(
            ln1_g=(1.0 + 0.1 * jax.random.normal(ks[8], (emb_dim,))).astype(jnp.float32),
            ln1_b=w(ks[9], (emb_dim,)),
            wqkv=w(ks[0], (emb_dim, 3 * emb_dim)),   # pre-transposed: x @ wqkv
            bqkv=w(ks[1], (3 * emb_dim,)),
            wo=w(ks[2], (emb_dim, emb_dim)),         # pre-transposed
            bo=w(ks[3], (emb_dim,)),
            ln2_g=(1.0 + 0.1 * jax.random.normal(ks[10], (emb_dim,))).astype(jnp.float32),
            ln2_b=w(ks[11], (emb_dim,)),
            w1=w(ks[4], (emb_dim, hidden_dim)),      # pre-transposed
            b1=w(ks[5], (hidden_dim,)),
            w2=w(ks[6], (hidden_dim, emb_dim)),      # pre-transposed
            b2=w(ks[7], (emb_dim,)),
        ))
    kf = jax.random.split(jax.random.fold_in(key, num_layers), 2)
    return dict(layers=layers,
                w_out=w(kf[0], (emb_dim, output_dim)),
                b_out=w(kf[1], (output_dim,)))


def prepare_params(params, num_heads):
    """One-time weight prep: fold LN affines and 1/sqrt(head_dim) into the following
    projections, then pack everything into 3 per-layer slabs + 1 head slab so the kernel
    takes 5 inputs (5 DMA descriptors) instead of 18."""
    layers = params["layers"]
    E = layers[0]["wqkv"].shape[0]
    scale = 1.0 / ((E // num_heads) ** 0.5)

    wslabs, w2s, bslabs = [], [], []
    for p in layers:
        # (norm(x)*g + b) @ W + c  ==  norm(x) @ (g[:,None]*W) + (b @ W + c)
        wqkv = p["ln1_g"][:, None] * p["wqkv"]
        bqkv = p["ln1_b"] @ p["wqkv"] + p["bqkv"]
        wqkv = wqkv.at[:, :E].multiply(scale)          # fold 1/sqrt(hd) into Q columns
        bqkv = bqkv.at[:E].multiply(scale)
        w1 = p["ln2_g"][:, None] * p["w1"]
        b1 = p["ln2_b"] @ p["w1"] + p["b1"]

        wslabs.append(jnp.concatenate([wqkv, p["wo"], w1], axis=1))          # (E, 4E+hidden)
        w2s.append(p["w2"])                                                   # (hidden, E)
        bslabs.append(jnp.concatenate([bqkv, p["bo"], b1, p["b2"]])[None])    # (1, 5E+hidden)

    head = jnp.concatenate([params["w_out"], params["b_out"][None, :]], axis=0)  # (E+1, OUT)
    return dict(wslab=jnp.stack(wslabs), w2slab=jnp.stack(w2s),
                bslab=jnp.stack(bslabs), head=head)


# ---------------- pure-JAX reference (mirrors the PyTorch forward, raw params) ----------------
def ref_merger(model_emb, text_emb, params, num_heads):
    x = jnp.concatenate([model_emb, text_emb], axis=1)
    n, e = x.shape
    hd = e // num_heads

    def ln(v, g, b):
        mu = v.mean(-1, keepdims=True)
        var = ((v - mu) ** 2).mean(-1, keepdims=True)
        return (v - mu) / jnp.sqrt(var + 1e-5) * g + b

    for p in params["layers"]:
        xn = ln(x, p["ln1_g"], p["ln1_b"])
        qkv = xn @ p["wqkv"] + p["bqkv"]
        q, k, v = jnp.split(qkv, 3, axis=-1)
        q = q.reshape(n, num_heads, hd).transpose(1, 0, 2) / jnp.sqrt(hd)
        k = k.reshape(n, num_heads, hd).transpose(1, 0, 2)
        v = v.reshape(n, num_heads, hd).transpose(1, 0, 2)
        a = jax.nn.softmax(q @ k.transpose(0, 2, 1), axis=-1)
        o = (a @ v).transpose(1, 0, 2).reshape(n, e)
        x = x + o @ p["wo"] + p["bo"]
        xn2 = ln(x, p["ln2_g"], p["ln2_b"])
        h1 = jax.nn.relu(xn2 @ p["w1"] + p["b1"])
        x = x + h1 @ p["w2"] + p["b2"]
    return jax.nn.sigmoid(x @ params["w_out"] + params["b_out"])


if __name__ == "__main__":
    N_ROWS = 8                       # rows of the merged embedding -> attention "sequence"
    MODEL_DIM, TEXT_DIM = 16, 16
    EMB = MODEL_DIM + TEXT_DIM       # 32, 4 heads of dim 8
    NUM_HEADS, HIDDEN, NUM_LAYERS = 4, 256, 2
    OUT_DIM = 16
    BATCH = 4                        # independent Merger problems amortized over one launch

    key = jax.random.PRNGKey(0)
    km, kt, kp = jax.random.split(key, 3)
    model_emb = jax.random.normal(km, (BATCH, N_ROWS, MODEL_DIM), dtype=jnp.float32)
    text_emb = jax.random.normal(kt, (BATCH, N_ROWS, TEXT_DIM), dtype=jnp.float32)

    params = init_params(kp, EMB, HIDDEN, NUM_LAYERS, OUT_DIM)
    prep = prepare_params(params, NUM_HEADS)

    # batched path: one pallas_call, grid over the BATCH independent problems
    out = merger_forward(model_emb, text_emb, prep,
                         num_heads=NUM_HEADS, output_dim=OUT_DIM)
    out = jax.block_until_ready(out)

    ref = jnp.stack([ref_merger(model_emb[b], text_emb[b], params, NUM_HEADS)
                     for b in range(BATCH)])
    assert out.shape == (BATCH, N_ROWS, OUT_DIM)
    # tolerance leaves room for the approximate-reciprocal softmax normalization
    assert jnp.allclose(out, ref, atol=2e-3, rtol=2e-3), (
        f"mismatch vs reference: max abs err {float(jnp.max(jnp.abs(out - ref)))}")

    # unbatched path: exactly the torch Merger signature (2-D inputs)
    out1 = merger_forward(model_emb[0], text_emb[0], prep,
                          num_heads=NUM_HEADS, output_dim=OUT_DIM)
    out1 = jax.block_until_ready(out1)
    assert out1.shape == (N_ROWS, OUT_DIM)
    assert jnp.allclose(out1, ref[0], atol=2e-3, rtol=2e-3), (
        f"unbatched mismatch: max abs err {float(jnp.max(jnp.abs(out1 - ref[0])))}")

    print("KERNEL_OK")
</pallas_src>

<mosaic_0001>
module attributes {stable_mosaic.version = 11 : i64} {
  func.func @merger_kernel(%arg0: i32, %arg1: memref<1x8x32xf32, #tpu.memory_space<vmem>>, %arg2: memref<2x32x384xf32, #tpu.memory_space<vmem>>, %arg3: memref<2x256x32xf32, #tpu.memory_space<vmem>>, %arg4: memref<2x1x416xf32, #tpu.memory_space<vmem>>, %arg5: memref<33x16xf32, #tpu.memory_space<vmem>>, %arg6: memref<1x8x16xf32, #tpu.memory_space<vmem>>) attributes {dimension_semantics = [#tpu.dimension_semantics<parallel>], iteration_bounds = array<i64: 4>, scalar_prefetch = 0 : i64, scratch_operands = 0 : i64, tpu.core_type = #tpu.core_type<tc>, window_params = [{transform_indices = @transform_0, window_bounds = array<i64: 1, 8, 32>}, {pipeline_mode = #tpu.pipeline_mode<synchronous>, transform_indices = @transform_1, window_bounds = array<i64: 2, 32, 384>}, {pipeline_mode = #tpu.pipeline_mode<synchronous>, transform_indices = @transform_2, window_bounds = array<i64: 2, 256, 32>}, {pipeline_mode = #tpu.pipeline_mode<synchronous>, transform_indices = @transform_3, window_bounds = array<i64: 2, 1, 416>}, {pipeline_mode = #tpu.pipeline_mode<synchronous>, transform_indices = @transform_4, window_bounds = array<i64: 33, 16>}, {transform_indices = @transform_5, window_bounds = array<i64: 1, 8, 16>}]} {
    %c0 = arith.constant 0 : index
    %c0_0 = arith.constant 0 : index
    %c0_1 = arith.constant 0 : index
    %0 = vector.load %arg1[%c0, %c0_0, %c0_1] : memref<1x8x32xf32, #tpu.memory_space<vmem>>, vector<1x8x32xf32>
    %1 = vector.shape_cast %0 : vector<1x8x32xf32> to vector<8x32xf32>
    %c0_2 = arith.constant 0 : index
    %c0_3 = arith.constant 0 : index
    %c0_4 = arith.constant 0 : index
    %2 = vector.load %arg2[%c0_2, %c0_3, %c0_4] : memref<2x32x384xf32, #tpu.memory_space<vmem>>, vector<1x32x96xf32>
    %3 = vector.shape_cast %2 : vector<1x32x96xf32> to vector<32x96xf32>
    %c0_5 = arith.constant 0 : index
    %c0_6 = arith.constant 0 : index
    %c96 = arith.constant 96 : index
    %4 = vector.load %arg2[%c0_5, %c0_6, %c96] : memref<2x32x384xf32, #tpu.memory_space<vmem>>, vector<1x32x32xf32>
    %5 = vector.shape_cast %4 : vector<1x32x32xf32> to vector<32x32xf32>
    %c0_7 = arith.constant 0 : index
    %c0_8 = arith.constant 0 : index
    %c128 = arith.constant 128 : index
    %6 = vector.load %arg2[%c0_7, %c0_8, %c128] : memref<2x32x384xf32, #tpu.memory_space<vmem>>, vector<1x32x256xf32>
    %7 = vector.shape_cast %6 : vector<1x32x256xf32> to vector<32x256xf32>
    %c0_9 = arith.constant 0 : index
    %c0_10 = arith.constant 0 : index
    %c0_11 = arith.constant 0 : index
    %8 = vector.load %arg3[%c0_9, %c0_10, %c0_11] : memref<2x256x32xf32, #tpu.memory_space<vmem>>, vector<1x256x32xf32>
    %9 = vector.shape_cast %8 : vector<1x256x32xf32> to vector<256x32xf32>
    %c0_12 = arith.constant 0 : index
    %c0_13 = arith.constant 0 : index
    %c0_14 = arith.constant 0 : index
    %10 = vector.load %arg4[%c0_12, %c0_13, %c0_14] : memref<2x1x416xf32, #tpu.memory_space<vmem>>, vector<1x1x96xf32>
    %11 = vector.shape_cast %10 : vector<1x1x96xf32> to vector<1x96xf32>
    %c0_15 = arith.constant 0 : index
    %c0_16 = arith.constant 0 : index
    %c96_17 = arith.constant 96 : index
    %12 = vector.load %arg4[%c0_15, %c0_16, %c96_17] : memref<2x1x416xf32, #tpu.memory_space<vmem>>, vector<1x1x32xf32>
    %13 = vector.shape_cast %12 : vector<1x1x32xf32> to vector<1x32xf32>
    %c0_18 = arith.constant 0 : index
    %c0_19 = arith.constant 0 : index
    %c128_20 = arith.constant 128 : index
    %14 = vector.load %arg4[%c0_18, %c0_19, %c128_20] : memref<2x1x416xf32, #tpu.memory_space<vmem>>, vector<1x1x256xf32>
    %15 = vector.shape_cast %14 : vector<1x1x256xf32> to vector<1x256xf32>
    %c0_21 = arith.constant 0 : index
    %c0_22 = arith.constant 0 : index
    %c384 = arith.constant 384 : index
    %16 = vector.load %arg4[%c0_21, %c0_22, %c384] : memref<2x1x416xf32, #tpu.memory_space<vmem>>, vector<1x1x32xf32>
    %17 = vector.shape_cast %16 : vector<1x1x32xf32> to vector<1x32xf32>
    %cst = arith.constant dense<0.000000e+00> : vector<8xf32>
    %18 = vector.multi_reduction <add>, %1, %cst [1] : vector<8x32xf32> to vector<8xf32>
    %19 = vector.shape_cast %18 : vector<8xf32> to vector<8x1xf32>
    %cst_23 = arith.constant 3.200000e+01 : f32
    %20 = vector.broadcast %cst_23 : f32 to vector<8x1xf32>
    %21 = arith.divf %19, %20 : vector<8x1xf32>
    %22 = vector.broadcast %21 : vector<8x1xf32> to vector<8x32xf32>
    %23 = arith.subf %1, %22 : vector<8x32xf32>
    %24 = arith.mulf %23, %23 : vector<8x32xf32>
    %cst_24 = arith.constant dense<0.000000e+00> : vector<8xf32>
    %25 = vector.multi_reduction <add>, %24, %cst_24 [1] : vector<8x32xf32> to vector<8xf32>
    %26 = vector.shape_cast %25 : vector<8xf32> to vector<8x1xf32>
    %cst_25 = arith.constant 3.200000e+01 : f32
    %27 = vector.broadcast %cst_25 : f32 to vector<8x1xf32>
    %28 = arith.divf %26, %27 : vector<8x1xf32>
    %cst_26 = arith.constant 9.99999974E-6 : f32
    %29 = vector.broadcast %cst_26 : f32 to vector<8x1xf32>
    %30 = arith.addf %28, %29 : vector<8x1xf32>
    %31 = math.rsqrt %30 : vector<8x1xf32>
    %32 = vector.broadcast %31 : vector<8x1xf32> to vector<8x32xf32>
    %33 = arith.mulf %23, %32 : vector<8x32xf32>
    %cst_27 = arith.constant dense<0.000000e+00> : vector<8x96xf32>
    %34 = tpu.matmul %33, %3, %cst_27 {dimension_numbers = #tpu.dot_dimension_numbers<[1], [0], [0], [1], [0, 0, 1, 1], [], []>} : vector<8x32xf32>, vector<32x96xf32>, vector<8x96xf32> -> vector<8x96xf32>
    %35 = vector.broadcast %11 : vector<1x96xf32> to vector<8x96xf32>
    %36 = arith.addf %34, %35 : vector<8x96xf32>
    %37 = vector.extract_strided_slice %36 {offsets = [0, 0], sizes = [8, 32], strides = [1, 1]} : vector<8x96xf32> to vector<8x32xf32>
    %38 = vector.shape_cast %37 : vector<8x32xf32> to vector<8x4x8xf32>
    %39 = tpu.transpose %38, [1, 0, 2] : vector<8x4x8xf32> -> vector<4x8x8xf32>
    %40 = vector.extract_strided_slice %36 {offsets = [0, 32], sizes = [8, 32], strides = [1, 1]} : vector<8x96xf32> to vector<8x32xf32>
    %41 = vector.shape_cast %40 : vector<8x32xf32> to vector<8x4x8xf32>
    %42 = tpu.transpose %41, [1, 0, 2] : vector<8x4x8xf32> -> vector<4x8x8xf32>
    %43 = vector.extract_strided_slice %36 {offsets = [0, 64], sizes = [8, 32], strides = [1, 1]} : vector<8x96xf32> to vector<8x32xf32>
    %44 = vector.shape_cast %43 : vector<8x32xf32> to vector<8x4x8xf32>
    %45 = tpu.transpose %44, [1, 0, 2] : vector<8x4x8xf32> -> vector<4x8x8xf32>
    "tpu.trace_start"() <{level = 10 : i32, message = "hqd,hkd->hqk"}> : () -> ()
    %cst_28 = arith.constant dense<0.000000e+00> : vector<4x8x8xf32>
    %46 = tpu.matmul %39, %42, %cst_28 {dimension_numbers = #tpu.dot_dimension_numbers<[2], [2], [1], [1], [0, 0, 0, 1, 1, 1], [0], [0]>} : vector<4x8x8xf32>, vector<4x8x8xf32>, vector<4x8x8xf32> -> vector<4x8x8xf32>
    "tpu.trace_stop"() : () -> ()
    %cst_29 = arith.constant dense<0xFF800000> : vector<4x8xf32>
    %47 = vector.multi_reduction <maximumf>, %46, %cst_29 [2] : vector<4x8x8xf32> to vector<4x8xf32>
    %48 = vector.shape_cast %47 : vector<4x8xf32> to vector<4x8x1xf32>
    %49 = vector.broadcast %48 : vector<4x8x1xf32> to vector<4x8x8xf32>
    %50 = arith.subf %46, %49 : vector<4x8x8xf32>
    %51 = math.exp %50 : vector<4x8x8xf32>
    %cst_30 = arith.constant dense<0.000000e+00> : vector<4x8xf32>
    %52 = vector.multi_reduction <add>, %51, %cst_30 [2] : vector<4x8x8xf32> to vector<4x8xf32>
    %53 = vector.shape_cast %52 : vector<4x8xf32> to vector<4x8x1xf32>
    %54 = tpu.reciprocal %53 {approx = true} : vector<4x8x1xf32> -> vector<4x8x1xf32>
    %55 = vector.broadcast %54 : vector<4x8x1xf32> to vector<4x8x8xf32>
    %56 = arith.mulf %51, %55 : vector<4x8x8xf32>
    "tpu.trace_start"() <{level = 10 : i32, message = "hqk,hkd->qhd"}> : () -> ()
    %cst_31 = arith.constant dense<0.000000e+00> : vector<4x8x8xf32>
    %57 = tpu.matmul %45, %56, %cst_31 {dimension_numbers = #tpu.dot_dimension_numbers<[1], [2], [2], [1], [0, 0, 0, 2, 1, 1], [0], [0]>} : vector<4x8x8xf32>, vector<4x8x8xf32>, vector<4x8x8xf32> -> vector<4x8x8xf32>
    %58 = tpu.transpose %57, [2, 0, 1] : vector<4x8x8xf32> -> vector<8x4x8xf32>
    "tpu.trace_stop"() : () -> ()
    %59 = vector.shape_cast %58 : vector<8x4x8xf32> to vector<8x32xf32>
    %cst_32 = arith.constant dense<0.000000e+00> : vector<8x32xf32>
    %60 = tpu.matmul %59, %5, %cst_32 {dimension_numbers = #tpu.dot_dimension_numbers<[1], [0], [0], [1], [0, 0, 1, 1], [], []>} : vector<8x32xf32>, vector<32x32xf32>, vector<8x32xf32> -> vector<8x32xf32>
    %61 = arith.addf %1, %60 : vector<8x32xf32>
    %62 = vector.broadcast %13 : vector<1x32xf32> to vector<8x32xf32>
    %63 = arith.addf %61, %62 : vector<8x32xf32>
    %cst_33 = arith.constant dense<0.000000e+00> : vector<8xf32>
    %64 = vector.multi_reduction <add>, %63, %cst_33 [1] : vector<8x32xf32> to vector<8xf32>
    %65 = vector.shape_cast %64 : vector<8xf32> to vector<8x1xf32>
    %cst_34 = arith.constant 3.200000e+01 : f32
    %66 = vector.broadcast %cst_34 : f32 to vector<8x1xf32>
    %67 = arith.divf %65, %66 : vector<8x1xf32>
    %68 = vector.broadcast %67 : vector<8x1xf32> to vector<8x32xf32>
    %69 = arith.subf %63, %68 : vector<8x32xf32>
    %70 = arith.mulf %69, %69 : vector<8x32xf32>
    %cst_35 = arith.constant dense<0.000000e+00> : vector<8xf32>
    %71 = vector.multi_reduction <add>, %70, %cst_35 [1] : vector<8x32xf32> to vector<8xf32>
    %72 = vector.shape_cast %71 : vector<8xf32> to vector<8x1xf32>
    %cst_36 = arith.constant 3.200000e+01 : f32
    %73 = vector.broadcast %cst_36 : f32 to vector<8x1xf32>
    %74 = arith.divf %72, %73 : vector<8x1xf32>
    %cst_37 = arith.constant 9.99999974E-6 : f32
    %75 = vector.broadcast %cst_37 : f32 to vector<8x1xf32>
    %76 = arith.addf %74, %75 : vector<8x1xf32>
    %77 = math.rsqrt %76 : vector<8x1xf32>
    %78 = vector.broadcast %77 : vector<8x1xf32> to vector<8x32xf32>
    %79 = arith.mulf %69, %78 : vector<8x32xf32>
    %cst_38 = arith.constant dense<0.000000e+00> : vector<8x256xf32>
    %80 = tpu.matmul %79, %7, %cst_38 {dimension_numbers = #tpu.dot_dimension_numbers<[1], [0], [0], [1], [0, 0, 1, 1], [], []>} : vector<8x32xf32>, vector<32x256xf32>, vector<8x256xf32> -> vector<8x256xf32>
    %81 = vector.broadcast %15 : vector<1x256xf32> to vector<8x256xf32>
    %82 = arith.addf %80, %81 : vector<8x256xf32>
    %cst_39 = arith.constant 0.000000e+00 : f32
    %83 = vector.broadcast %cst_39 : f32 to vector<8x256xf32>
    %84 = arith.maximumf %82, %83 : vector<8x256xf32>
    %cst_40 = arith.constant dense<0.000000e+00> : vector<8x32xf32>
    %85 = tpu.matmul %84, %9, %cst_40 {dimension_numbers = #tpu.dot_dimension_numbers<[1], [0], [0], [1], [0, 0, 1, 1], [], []>} : vector<8x256xf32>, vector<256x32xf32>, vector<8x32xf32> -> vector<8x32xf32>
    %86 = arith.addf %63, %85 : vector<8x32xf32>
    %87 = vector.broadcast %17 : vector<1x32xf32> to vector<8x32xf32>
    %88 = arith.addf %86, %87 : vector<8x32xf32>
    %c1 = arith.constant 1 : index
    %c0_41 = arith.constant 0 : index
    %c0_42 = arith.constant 0 : index
    %89 = vector.load %arg2[%c1, %c0_41, %c0_42] : memref<2x32x384xf32, #tpu.memory_space<vmem>>, vector<1x32x96xf32>
    %90 = vector.shape_cast %89 : vector<1x32x96xf32> to vector<32x96xf32>
    %c1_43 = arith.constant 1 : index
    %c0_44 = arith.constant 0 : index
    %c96_45 = arith.constant 96 : index
    %91 = vector.load %arg2[%c1_43, %c0_44, %c96_45] : memref<2x32x384xf32, #tpu.memory_space<vmem>>, vector<1x32x32xf32>
    %92 = vector.shape_cast %91 : vector<1x32x32xf32> to vector<32x32xf32>
    %c1_46 = arith.constant 1 : index
    %c0_47 = arith.constant 0 : index
    %c128_48 = arith.constant 128 : index
    %93 = vector.load %arg2[%c1_46, %c0_47, %c128_48] : memref<2x32x384xf32, #tpu.memory_space<vmem>>, vector<1x32x256xf32>
    %94 = vector.shape_cast %93 : vector<1x32x256xf32> to vector<32x256xf32>
    %c1_49 = arith.constant 1 : index
    %c0_50 = arith.constant 0 : index
    %c0_51 = arith.constant 0 : index
    %95 = vector.load %arg3[%c1_49, %c0_50, %c0_51] : memref<2x256x32xf32, #tpu.memory_space<vmem>>, vector<1x256x32xf32>
    %96 = vector.shape_cast %95 : vector<1x256x32xf32> to vector<256x32xf32>
    %c1_52 = arith.constant 1 : index
    %c0_53 = arith.constant 0 : index
    %c0_54 = arith.constant 0 : index
    %97 = vector.load %arg4[%c1_52, %c0_53, %c0_54] : memref<2x1x416xf32, #tpu.memory_space<vmem>>, vector<1x1x96xf32>
    %98 = vector.shape_cast %97 : vector<1x1x96xf32> to vector<1x96xf32>
    %c1_55 = arith.constant 1 : index
    %c0_56 = arith.constant 0 : index
    %c96_57 = arith.constant 96 : index
    %99 = vector.load %arg4[%c1_55, %c0_56, %c96_57] : memref<2x1x416xf32, #tpu.memory_space<vmem>>, vector<1x1x32xf32>
    %100 = vector.shape_cast %99 : vector<1x1x32xf32> to vector<1x32xf32>
    %c1_58 = arith.constant 1 : index
    %c0_59 = arith.constant 0 : index
    %c128_60 = arith.constant 128 : index
    %101 = vector.load %arg4[%c1_58, %c0_59, %c128_60] : memref<2x1x416xf32, #tpu.memory_space<vmem>>, vector<1x1x256xf32>
    %102 = vector.shape_cast %101 : vector<1x1x256xf32> to vector<1x256xf32>
    %c1_61 = arith.constant 1 : index
    %c0_62 = arith.constant 0 : index
    %c384_63 = arith.constant 384 : index
    %103 = vector.load %arg4[%c1_61, %c0_62, %c384_63] : memref<2x1x416xf32, #tpu.memory_space<vmem>>, vector<1x1x32xf32>
    %104 = vector.shape_cast %103 : vector<1x1x32xf32> to vector<1x32xf32>
    %cst_64 = arith.constant dense<0.000000e+00> : vector<8xf32>
    %105 = vector.multi_reduction <add>, %88, %cst_64 [1] : vector<8x32xf32> to vector<8xf32>
    %106 = vector.shape_cast %105 : vector<8xf32> to vector<8x1xf32>
    %cst_65 = arith.constant 3.200000e+01 : f32
    %107 = vector.broadcast %cst_65 : f32 to vector<8x1xf32>
    %108 = arith.divf %106, %107 : vector<8x1xf32>
    %109 = vector.broadcast %108 : vector<8x1xf32> to vector<8x32xf32>
    %110 = arith.subf %88, %109 : vector<8x32xf32>
    %111 = arith.mulf %110, %110 : vector<8x32xf32>
    %cst_66 = arith.constant dense<0.000000e+00> : vector<8xf32>
    %112 = vector.multi_reduction <add>, %111, %cst_66 [1] : vector<8x32xf32> to vector<8xf32>
    %113 = vector.shape_cast %112 : vector<8xf32> to vector<8x1xf32>
    %cst_67 = arith.constant 3.200000e+01 : f32
    %114 = vector.broadcast %cst_67 : f32 to vector<8x1xf32>
    %115 = arith.divf %113, %114 : vector<8x1xf32>
    %cst_68 = arith.constant 9.99999974E-6 : f32
    %116 = vector.broadcast %cst_68 : f32 to vector<8x1xf32>
    %117 = arith.addf %115, %116 : vector<8x1xf32>
    %118 = math.rsqrt %117 : vector<8x1xf32>
    %119 = vector.broadcast %118 : vector<8x1xf32> to vector<8x32xf32>
    %120 = arith.mulf %110, %119 : vector<8x32xf32>
    %cst_69 = arith.constant dense<0.000000e+00> : vector<8x96xf32>
    %121 = tpu.matmul %120, %90, %cst_69 {dimension_numbers = #tpu.dot_dimension_numbers<[1], [0], [0], [1], [0, 0, 1, 1], [], []>} : vector<8x32xf32>, vector<32x96xf32>, vector<8x96xf32> -> vector<8x96xf32>
    %122 = vector.broadcast %98 : vector<1x96xf32> to vector<8x96xf32>
    %123 = arith.addf %121, %122 : vector<8x96xf32>
    %124 = vector.extract_strided_slice %123 {offsets = [0, 0], sizes = [8, 32], strides = [1, 1]} : vector<8x96xf32> to vector<8x32xf32>
    %125 = vector.shape_cast %124 : vector<8x32xf32> to vector<8x4x8xf32>
    %126 = tpu.transpose %125, [1, 0, 2] : vector<8x4x8xf32> -> vector<4x8x8xf32>
    %127 = vector.extract_strided_slice %123 {offsets = [0, 32], sizes = [8, 32], strides = [1, 1]} : vector<8x96xf32> to vector<8x32xf32>
    %128 = vector.shape_cast %127 : vector<8x32xf32> to vector<8x4x8xf32>
    %129 = tpu.transpose %128, [1, 0, 2] : vector<8x4x8xf32> -> vector<4x8x8xf32>
    %130 = vector.extract_strided_slice %123 {offsets = [0, 64], sizes = [8, 32], strides = [1, 1]} : vector<8x96xf32> to vector<8x32xf32>
    %131 = vector.shape_cast %130 : vector<8x32xf32> to vector<8x4x8xf32>
    %132 = tpu.transpose %131, [1, 0, 2] : vector<8x4x8xf32> -> vector<4x8x8xf32>
    "tpu.trace_start"() <{level = 10 : i32, message = "hqd,hkd->hqk"}> : () -> ()
    %cst_70 = arith.constant dense<0.000000e+00> : vector<4x8x8xf32>
    %133 = tpu.matmul %126, %129, %cst_70 {dimension_numbers = #tpu.dot_dimension_numbers<[2], [2], [1], [1], [0, 0, 0, 1, 1, 1], [0], [0]>} : vector<4x8x8xf32>, vector<4x8x8xf32>, vector<4x8x8xf32> -> vector<4x8x8xf32>
    "tpu.trace_stop"() : () -> ()
    %cst_71 = arith.constant dense<0xFF800000> : vector<4x8xf32>
    %134 = vector.multi_reduction <maximumf>, %133, %cst_71 [2] : vector<4x8x8xf32> to vector<4x8xf32>
    %135 = vector.shape_cast %134 : vector<4x8xf32> to vector<4x8x1xf32>
    %136 = vector.broadcast %135 : vector<4x8x1xf32> to vector<4x8x8xf32>
    %137 = arith.subf %133, %136 : vector<4x8x8xf32>
    %138 = math.exp %137 : vector<4x8x8xf32>
    %cst_72 = arith.constant dense<0.000000e+00> : vector<4x8xf32>
    %139 = vector.multi_reduction <add>, %138, %cst_72 [2] : vector<4x8x8xf32> to vector<4x8xf32>
    %140 = vector.shape_cast %139 : vector<4x8xf32> to vector<4x8x1xf32>
    %141 = tpu.reciprocal %140 {approx = true} : vector<4x8x1xf32> -> vector<4x8x1xf32>
    %142 = vector.broadcast %141 : vector<4x8x1xf32> to vector<4x8x8xf32>
    %143 = arith.mulf %138, %142 : vector<4x8x8xf32>
    "tpu.trace_start"() <{level = 10 : i32, message = "hqk,hkd->qhd"}> : () -> ()
    %cst_73 = arith.constant dense<0.000000e+00> : vector<4x8x8xf32>
    %144 = tpu.matmul %132, %143, %cst_73 {dimension_numbers = #tpu.dot_dimension_numbers<[1], [2], [2], [1], [0, 0, 0, 2, 1, 1], [0], [0]>} : vector<4x8x8xf32>, vector<4x8x8xf32>, vector<4x8x8xf32> -> vector<4x8x8xf32>
    %145 = tpu.transpose %144, [2, 0, 1] : vector<4x8x8xf32> -> vector<8x4x8xf32>
    "tpu.trace_stop"() : () -> ()
    %146 = vector.shape_cast %145 : vector<8x4x8xf32> to vector<8x32xf32>
    %cst_74 = arith.constant dense<0.000000e+00> : vector<8x32xf32>
    %147 = tpu.matmul %146, %92, %cst_74 {dimension_numbers = #tpu.dot_dimension_numbers<[1], [0], [0], [1], [0, 0, 1, 1], [], []>} : vector<8x32xf32>, vector<32x32xf32>, vector<8x32xf32> -> vector<8x32xf32>
    %148 = arith.addf %88, %147 : vector<8x32xf32>
    %149 = vector.broadcast %100 : vector<1x32xf32> to vector<8x32xf32>
    %150 = arith.addf %148, %149 : vector<8x32xf32>
    %cst_75 = arith.constant dense<0.000000e+00> : vector<8xf32>
    %151 = vector.multi_reduction <add>, %150, %cst_75 [1] : vector<8x32xf32> to vector<8xf32>
    %152 = vector.shape_cast %151 : vector<8xf32> to vector<8x1xf32>
    %cst_76 = arith.constant 3.200000e+01 : f32
    %153 = vector.broadcast %cst_76 : f32 to vector<8x1xf32>
    %154 = arith.divf %152, %153 : vector<8x1xf32>
    %155 = vector.broadcast %154 : vector<8x1xf32> to vector<8x32xf32>
    %156 = arith.subf %150, %155 : vector<8x32xf32>
    %157 = arith.mulf %156, %156 : vector<8x32xf32>
    %cst_77 = arith.constant dense<0.000000e+00> : vector<8xf32>
    %158 = vector.multi_reduction <add>, %157, %cst_77 [1] : vector<8x32xf32> to vector<8xf32>
    %159 = vector.shape_cast %158 : vector<8xf32> to vector<8x1xf32>
    %cst_78 = arith.constant 3.200000e+01 : f32
    %160 = vector.broadcast %cst_78 : f32 to vector<8x1xf32>
    %161 = arith.divf %159, %160 : vector<8x1xf32>
    %cst_79 = arith.constant 9.99999974E-6 : f32
    %162 = vector.broadcast %cst_79 : f32 to vector<8x1xf32>
    %163 = arith.addf %161, %162 : vector<8x1xf32>
    %164 = math.rsqrt %163 : vector<8x1xf32>
    %165 = vector.broadcast %164 : vector<8x1xf32> to vector<8x32xf32>
    %166 = arith.mulf %156, %165 : vector<8x32xf32>
    %cst_80 = arith.constant dense<0.000000e+00> : vector<8x256xf32>
    %167 = tpu.matmul %166, %94, %cst_80 {dimension_numbers = #tpu.dot_dimension_numbers<[1], [0], [0], [1], [0, 0, 1, 1], [], []>} : vector<8x32xf32>, vector<32x256xf32>, vector<8x256xf32> -> vector<8x256xf32>
    %168 = vector.broadcast %102 : vector<1x256xf32> to vector<8x256xf32>
    %169 = arith.addf %167, %168 : vector<8x256xf32>
    %cst_81 = arith.constant 0.000000e+00 : f32
    %170 = vector.broadcast %cst_81 : f32 to vector<8x256xf32>
    %171 = arith.maximumf %169, %170 : vector<8x256xf32>
    %cst_82 = arith.constant dense<0.000000e+00> : vector<8x32xf32>
    %172 = tpu.matmul %171, %96, %cst_82 {dimension_numbers = #tpu.dot_dimension_numbers<[1], [0], [0], [1], [0, 0, 1, 1], [], []>} : vector<8x256xf32>, vector<256x32xf32>, vector<8x32xf32> -> vector<8x32xf32>
    %173 = arith.addf %150, %172 : vector<8x32xf32>
    %174 = vector.broadcast %104 : vector<1x32xf32> to vector<8x32xf32>
    %175 = arith.addf %173, %174 : vector<8x32xf32>
    %c0_83 = arith.constant 0 : index
    %c0_84 = arith.constant 0 : index
    %176 = vector.load %arg5[%c0_83, %c0_84] : memref<33x16xf32, #tpu.memory_space<vmem>>, vector<32x16xf32>
    %c32 = arith.constant 32 : index
    %c0_85 = arith.constant 0 : index
    %177 = vector.load %arg5[%c32, %c0_85] : memref<33x16xf32, #tpu.memory_space<vmem>>, vector<1x16xf32>
    %cst_86 = arith.constant dense<0.000000e+00> : vector<8x16xf32>
    %178 = tpu.matmul %175, %176, %cst_86 {dimension_numbers = #tpu.dot_dimension_numbers<[1], [0], [0], [1], [0, 0, 1, 1], [], []>} : vector<8x32xf32>, vector<32x16xf32>, vector<8x16xf32> -> vector<8x16xf32>
    %179 = vector.broadcast %177 : vector<1x16xf32> to vector<8x16xf32>
    %180 = arith.addf %178, %179 : vector<8x16xf32>
    %cst_87 = arith.constant 0.000000e+00 : f32
    %181 = vector.broadcast %cst_87 : f32 to vector<8x16xf32>
    %182 = arith.subf %181, %180 : vector<8x16xf32>
    %183 = math.exp %182 : vector<8x16xf32>
    %cst_88 = arith.constant 1.000000e+00 : f32
    %184 = vector.broadcast %cst_88 : f32 to vector<8x16xf32>
    %185 = arith.addf %184, %183 : vector<8x16xf32>
    %cst_89 = arith.constant 1.000000e+00 : f32
    %186 = vector.broadcast %cst_89 : f32 to vector<8x16xf32>
    %187 = arith.divf %186, %185 : vector<8x16xf32>
    %c0_90 = arith.constant 0 : index
    %c0_91 = arith.constant 0 : index
    %c0_92 = arith.constant 0 : index
    %188 = vector.load %arg6[%c0_90, %c0_91, %c0_92] : memref<1x8x16xf32, #tpu.memory_space<vmem>>, vector<1x8x16xf32>
    %189 = vector.shape_cast %188 : vector<1x8x16xf32> to vector<8x16xf32>
    %190 = vector.shape_cast %187 : vector<8x16xf32> to vector<1x8x16xf32>
    tpu.vector_store %arg6[%c0_90, %c0_91, %c0_92], %190 {strides = array<i32>} : memref<1x8x16xf32, #tpu.memory_space<vmem>>, vector<1x8x16xf32>,
    return
  }
  func.func @transform_0(%arg0: i32) -> (i32, i32, i32) {
    %c0_i32 = arith.constant 0 : i32
    %c0_i32_0 = arith.constant 0 : i32
    %c0_i32_1 = arith.constant 0 : i32
    return %arg0, %c0_i32, %c0_i32_0 : i32, i32, i32
  }
  func.func @transform_1(%arg0: i32) -> (i32, i32, i32) {
    %c0_i32 = arith.constant 0 : i32
    %c0_i32_0 = arith.constant 0 : i32
    %c0_i32_1 = arith.constant 0 : i32
    %c0_i32_2 = arith.constant 0 : i32
    return %c0_i32, %c0_i32_0, %c0_i32_1 : i32, i32, i32
  }
  func.func @transform_2(%arg0: i32) -> (i32, i32, i32) {
    %c0_i32 = arith.constant 0 : i32
    %c0_i32_0 = arith.constant 0 : i32
    %c0_i32_1 = arith.constant 0 : i32
    %c0_i32_2 = arith.constant 0 : i32
    return %c0_i32, %c0_i32_0, %c0_i32_1 : i32, i32, i32
  }
  func.func @transform_3(%arg0: i32) -> (i32, i32, i32) {
    %c0_i32 = arith.constant 0 : i32
    %c0_i32_0 = arith.constant 0 : i32
    %c0_i32_1 = arith.constant 0 : i32
    %c0_i32_2 = arith.constant 0 : i32
    return %c0_i32, %c0_i32_0, %c0_i32_1 : i32, i32, i32
  }
  func.func @transform_4(%arg0: i32) -> (i32, i32) {
    %c0_i32 = arith.constant 0 : i32
    %c0_i32_0 = arith.constant 0 : i32
    %c0_i32_1 = arith.constant 0 : i32
    return %c0_i32, %c0_i32_0 : i32, i32
  }
  func.func @transform_5(%arg0: i32) -> (i32, i32, i32) {
    %c0_i32 = arith.constant 0 : i32
    %c0_i32_0 = arith.constant 0 : i32
    %c0_i32_1 = arith.constant 0 : i32
    return %arg0, %c0_i32, %c0_i32_0 : i32, i32, i32
  }
}

</mosaic_0001>

<bundles_post_ra>
// kernel: tpu_custom_call.1
= control target key start
LH: loop header
LB: loop body
LE: loop exit
PB: predicated region body
PF: predicated region fallthrough
CT: control target
= control target key end

     0   :  { %10 = vsyncpa [#allocation3], 0  ;;  %s5660_s0 = inlined_call_operand.vmem [shape: f32[4,8,32], index: 0, kind: input, shape index: {}]   ;;  %s5661_s1 = inlined_call_operand.vmem [shape: f32[2,32,384], index: 1, kind: input, shape index: {}]   ;;  %s5662_s2 = inlined_call_operand.vmem [shape: f32[2,256,32], index: 2, kind: input, shape index: {}]   ;;  %s5663_s3 = inlined_call_operand.vmem [shape: f32[2,1,416], index: 3, kind: input, shape index: {}]   ;;  %s5664_s4 = inlined_call_operand.vmem [shape: f32[33,16], index: 4, kind: input, shape index: {}]   ;;  %s5665_s5 = inlined_call_operand.hbm [shape: f32[4,8,16], index: 5, kind: output, shape index: {}]  }
   0x1   :  { %12 = vsyncpa [#allocation3 + $0x1], 0  ;;  %s4796_s18 = smov 0   ;;  %s4798_s19 = smov 0  }
   0x2   :  { %s4800_s20 = smov 0   ;;  %s4802_s21 = smov 0  }
   0x3 LB: > { %s4817_s22 = sadd.s32 4294967295, %s4750_s21   ;;  %s4215_s23 = sadd.s32 4294967294, %s4750_s21   ;;  %s4750_s21 = sphi %s4802_s21, %s5677_s21   ;;  %s4746_s20 = sphi %s4800_s20, %s5676_s20   ;;  %s4742_s19 = sphi %s4798_s19, %s5675_s19   ;;  %s4738_s18 = sphi %s4796_s18, %s5674_s18  }
   0x4   : > { %s4821_s24 = sadd.s32 1, %s4750_s21   ;;  %s135_s25 = sadd.s32 1, %s4746_s20 }
   0x5   : > { %s132_s26 = ssub.s32 %s4750_s21, %s4821_s24  ;;  %p145_p0 = scmp.ne.s32.totalorder %s4746_s20, %s4742_s19 }
   0x6   : > { %p133_p1 = scmp.eq.s32.totalorder %s132_s26, 0  ;;  %p146_p2 = scmp.eq.s32.totalorder %s4817_s22, 3 }
   0x7   : > { %p151_p3 = scmp.ne.s32.totalorder %s4742_s19, %s4738_s18  ;;  %p152_p4 = scmp.eq.s32.totalorder %s4215_s23, 3 }
   0x8   : > { %s4832_s27 = scalar_select %p133_p1, %s4746_s20, %s135_s25  }
   0x9   : > { %p4834_p5 = por %p146_p2, %p145_p0  ;;  %p4838_p6 = por %p152_p4, %p151_p3 }
   0xa   : > { %p4218_p7 = scmp.ge.s32.totalorder %s4750_s21, 1  ;;  %p189_p8 = scmp.lt.s32.totalorder %s4750_s21, 5 }
   0xc   : > { %p190_p9 = pnand %p4218_p7, %p189_p8 }
   0xd   : > { %p216_p10 = scmp.lt.s32.totalorder (!%p190_p9), %s4817_s22, 3  ;;  %s4754_s26 = smov (!%p190_p9), 104  }
   0xe   : > { %193 = sbr.rel (%p190_p9) target bundleno = 5586 (0x15d2), region = 40  ;;  %s4757_s7 = smov (!%p190_p9), 96  }
   0xf   : > { %s4760_s8 = smov (!%p190_p9), 64   ;;  %s5667_s10 = smov (!%p190_p9), 8  }
  0x10   : > { %s5666_s11 = smov (!%p190_p9), 16   ;;  %s5668_s12 = smov (!%p190_p9), 24  }
  0x11   : > { %s4765_s25 = smov (!%p190_p9), [#allocation2]  }
  0x12   : > { %s4694_s13 = sshll.u32 (!%p190_p9), %s4765_s25, 4  ;;  %s4695_s13 = int_to_ptr.vmem [resolvable:$false] %s4694_s13 }
  0x13   : > { %s217_s30 = scalar_select %p216_p10, %s4817_s22, 3  ;;  %vm268_vm0 = vcmask 261120   ;;  %v4858_v7 = vld [vmem:[%s5661_s1 + $0x48] sm:$0xff]  ;;  %v4752_v8 = vmov 0.0   ;;  %v4864_v9 = vld [vmem:[%s5661_s1 + $0x30] sm:$0xff]  ;;  %vm4753_vm1 = vmmov 0   ;;  %v377_v26 = vlaneseq }
  0x14   : > { %4459 = vmatprep.subr.mxu1 %v4752_v8  ;;  %4467 = vmatprep.mubr.msk.f32.mxu1 %vm4753_vm1, %v4752_v8  ;;  %v4874_v10 = vld [vmem:[%s5661_s1 + $0x18] sm:$0xff]  ;;  %v4883_v11 = vld [vmem:[%s5661_s1] sm:$0xff]  ;;  %v4758_v24 = vmov 1983009808   ;;  %v4759_v29 = vmov 1934713408  }
  0x15   : > { %s4220_s6 = sshll.u32 %s217_s30, 3  ;;  %4460 = vmatpush3.msra.mxu1 %v4858_v7  ;;  %4490 = vmatprep.subr.mxu0 %v4752_v8  ;;  %v4895_v17 = vld [vmem:[%s5663_s3] ss:$0 sm:$0xff]  ;;  %s4755_s30 = smov 120   ;;  %v375_v25 = vunpack.c.l.s4 %v4758_v24  ;;  %v4920_v28 = vshrl.u32 %v377_v26, 7  ;;  %v407_v30 = vunpack.c.l.s4 %v4759_v29  ;;  %vm804_vm2 = vcmask 64512  }
  0x16   : > { %s219_s9 = scalar_lea.vmem %s5660_s0, %s4220_s6  ;;  %4461 = vmatprep.subr.mxu1 %v4752_v8  ;;  %4492 = vmatprep.mubr.msk.f32.mxu0 %vm4753_vm1, %v4752_v8  ;;  %s4756_s6 = smov 112   ;;  %vm1862_vm3 = vcmask 130048   ;;  %vm1864_vm4 = vcmask 195584  }
  0x17   : > { %v4849_v0 = vld [vmem:[%s219_s9] sm:$0xff]  ;;  %4462 = vmatpush3.msra.mxu1 %v4864_v9  ;;  %v376_v27 = vunpack.c.0.s8 %v375_v25  ;;  %v408_v37 = vunpack.c.0.s8 %v407_v30  ;;  %s4761_s9 = smov 32  }
  0x18   : > { %v269_v1 = vsel %vm268_vm0, %v4849_v0, 0.0  ;;  %4463 = vmatprep.subr.mxu1 %v4752_v8 }
  0x19   : > { %270 = vadd.xlane.f32.xlu0 %v269_v1  ;;  %4464 = vmatpush3.msra.mxu1 %v4874_v10  ;;  %v4927_v34 = vsub.s32 %v376_v27, %v4920_v28  ;;  %v4938_v43 = vsub.s32 %v408_v37, %v4920_v28 }
  0x1a   : > { %4465 = vmatprep.subr.mxu1 %v4752_v8 }
  0x1b   : > { %4466 = vmatpush3.msra.mxu1 %v4883_v11 }
  0x1c   : > { %4470 = vmatprep.subr.mxu1 %v4752_v8 }
  0xa2   : > { %v271_v2 = vpop.xlane.xlu0 %270 }
  0xa3   : > { %v273_v3 = vmul.f32 0.03125, %v271_v2 }
  0xa5   : > { %v274_v4 = vsub.f32 %v4849_v0, %v273_v3 }
  0xa7   : > { %v275_v5 = vmul.f32 %v274_v4, %v274_v4 }
  0xa9   : > { %v276_v6 = vsel %vm268_vm0, %v275_v5, 0.0 }
  0xaa   : > { %277 = vadd.xlane.f32.xlu0 %v276_v6 }
 0x133   : > { %v278_v12 = vpop.xlane.xlu0 %277 }
 0x134   : > { %v279_v13 = vmul.f32 0.03125, %v278_v12 }
 0x136   : > { %v280_v14 = vadd.f32 1e-05, %v279_v13 }
 0x138   : > { %4646 = vrsqrt.f32 %v280_v14 }
 0x145   : > { %v4647_v15 = vpop.eup %4646 }
 0x146   : > { %v282_v16 = vmul.f32 %v4647_v15, %v274_v4 }
 0x148   : > { %4468 = vmatmul.mubr.msk.f32.vlgmr.msra.gmra.mxu1 %vm268_vm0, %v282_v16 }
 0x149   : > { %4472 = vmatprep.mubr.msk.f32.mxu1 %vm4753_vm1, %v4752_v8 }
 0x208   : > { %v358_v18 = vpop.f32.mrf.mxu1 }
 0x209   : > { %v4898_v19 = vadd.f32 %v4895_v17, %v358_v18 }
 0x20a   : > { %v4469_v20 = vpop.f32.mrf.mxu1 }
 0x20b   : > { %369 = vrot.lane.b32.xlu0 %v4898_v19, %s4754_s26  ;;  %363 = vrot.lane.b32.xlu1 %v4898_v19, %s4755_s30 }
 0x20f   : > { %366 = vrot.lane.b32.xlu1 %v4898_v19, %s4756_s6 }
 0x213   : > { %508 = vrot.lane.b32.xlu1 %v4898_v19, %s4757_s7 }
 0x27d   : > { %v4908_v21 = vpop.permute.xlu1 %363  ;;  %v4916_v23 = vpop.permute.xlu0 %369 }
 0x27e   : > { %510 = vrot.lane.b32.xlu1 %v4908_v21, %s4757_s7  ;;  %v388_v35 = vcombine.low %v4908_v21, %v4916_v23  ;;  %v389_v36 = vcombine.high %v4908_v21, %v4916_v23 }
 0x280   : > { %v396_v41 = vrot.slane %v388_v35, %v4927_v34  ;;  %v403_v42 = vrot.slane %v389_v36, %v4927_v34 }
 0x281   : > { %v4912_v22 = vpop.permute.xlu1 %366 }
 0x282   : > { %512 = vrot.lane.b32.xlu1 %v4912_v22, %s4757_s7  ;;  %v372_v31 = vcombine.low %v4898_v19, %v4912_v22  ;;  %v373_v32 = vcombine.high %v4898_v19, %v4912_v22 }
 0x284   : > { %v380_v38 = vrot.slane %v372_v31, %v4927_v34  ;;  %v387_v39 = vrot.slane %v373_v32, %v4927_v34 }
 0x285   : > { %v509_v33 = vpop.permute.xlu1 %508 }
 0x286   : > { %514 = vrot.lane.b32.xlu1 %v4916_v23, %s4757_s7  ;;  %v404_v44 = vcombine.low %v380_v38, %v396_v41  ;;  %v405_v45 = vcombine.high %v380_v38, %v396_v41  ;;  %v420_v46 = vcombine.low %v387_v39, %v403_v42  ;;  %v421_v47 = vcombine.high %v387_v39, %v403_v42 }
 0x288   : > { %v412_v51 = vrot.slane %v404_v44, %v4938_v43  ;;  %v419_v52 = vrot.slane %v405_v45, %v4938_v43  ;;  %v428_v53 = vrot.slane %v420_v46, %v4938_v43  ;;  %v435_v54 = vrot.slane %v421_v47, %v4938_v43 }
 0x28a   : > { %v440_v62 = vcombine.low %v412_v51, %v419_v52  ;;  %v4223_v63 = vcombine.high %v412_v51, %v419_v52  ;;  %v456_v1 = vcombine.low %v428_v53, %v435_v54  ;;  %v4224_v2 = vcombine.high %v428_v53, %v435_v54 }
 0x28c   : > { %v447_v16 = vrot.slane %v440_v62, %v4927_v34  ;;  %v455_v18 = vrot.slane %v4223_v63, %v4927_v34  ;;  %v463_v20 = vrot.slane %v456_v1, %v4927_v34  ;;  %v471_v24 = vrot.slane %v4224_v2, %v4927_v34 }
 0x28e   : > { %v472_v35 = vcombine.low %v447_v16, %v455_v18  ;;  %v488_v36 = vcombine.low %v463_v20, %v471_v24 }
 0x290   : > { %v480_v41 = vrot.slane %v472_v35, %v4938_v43  ;;  %v496_v42 = vrot.slane %v488_v36, %v4938_v43 }
 0x292   : > { %v504_v47 = vcombine.low %v480_v41, %v496_v42  ;;  %v505_v53 = vcombine.high %v480_v41, %v496_v42 }
 0x2f0   : > { %v511_v40 = vpop.permute.xlu1 %510 }
 0x2f4   : > { %v513_v48 = vpop.permute.xlu1 %512 }
 0x2f5   : > { %v520_v49 = vcombine.low %v509_v33, %v513_v48  ;;  %v521_v50 = vcombine.high %v509_v33, %v513_v48  ;;  %v473_v48 = vcombine.high %v447_v16, %v455_v18 }
 0x2f7   : > { %v528_v58 = vrot.slane %v520_v49, %v4927_v34  ;;  %v535_v59 = vrot.slane %v521_v50, %v4927_v34  ;;  %v489_v49 = vcombine.high %v463_v20, %v471_v24  ;;  %v487_v54 = vrot.slane %v473_v48, %v4938_v43 }
 0x2f8   : > { %v515_v55 = vpop.permute.xlu1 %514 }
 0x2f9   : > { %v536_v56 = vcombine.low %v511_v40, %v515_v55  ;;  %v537_v57 = vcombine.high %v511_v40, %v515_v55  ;;  %v503_v55 = vrot.slane %v489_v49, %v4938_v43 }
 0x2fb   : > { %v544_v60 = vrot.slane %v536_v56, %v4927_v34  ;;  %v551_v61 = vrot.slane %v537_v57, %v4927_v34  ;;  %v506_v57 = vcombine.low %v487_v54, %v503_v55 }
 0x2fd   : > { %v552_v3 = vcombine.low %v528_v58, %v544_v60  ;;  %v553_v4 = vcombine.high %v528_v58, %v544_v60  ;;  %v568_v5 = vcombine.low %v535_v59, %v551_v61  ;;  %v569_v6 = vcombine.high %v535_v59, %v551_v61 }
 0x2fe   : > { %v507_v59 = vcombine.high %v487_v54, %v503_v55 }
 0x2ff   : > { %v560_v12 = vrot.slane %v552_v3, %v4938_v43  ;;  %v567_v13 = vrot.slane %v553_v4, %v4938_v43  ;;  %v576_v14 = vrot.slane %v568_v5, %v4938_v43  ;;  %v583_v15 = vrot.slane %v569_v6, %v4938_v43 }
 0x301   : > { %v588_v25 = vcombine.low %v560_v12, %v567_v13  ;;  %v4225_v26 = vcombine.high %v560_v12, %v567_v13  ;;  %v604_v27 = vcombine.low %v576_v14, %v583_v15  ;;  %v4226_v29 = vcombine.high %v576_v14, %v583_v15 }
 0x303   : > { %v595_v30 = vrot.slane %v588_v25, %v4927_v34  ;;  %v603_v31 = vrot.slane %v4225_v26, %v4927_v34  ;;  %v611_v32 = vrot.slane %v604_v27, %v4927_v34  ;;  %v619_v33 = vrot.slane %v4226_v29, %v4927_v34 }
 0x305   : > { %v620_v37 = vcombine.low %v595_v30, %v603_v31  ;;  %v636_v38 = vcombine.low %v611_v32, %v619_v33  ;;  %v621_v44 = vcombine.high %v595_v30, %v603_v31  ;;  %v637_v45 = vcombine.high %v611_v32, %v619_v33 }
 0x307   : > { %v628_v39 = vrot.slane %v620_v37, %v4938_v43  ;;  %v644_v40 = vrot.slane %v636_v38, %v4938_v43  ;;  %v635_v51 = vrot.slane %v621_v44, %v4938_v43  ;;  %v651_v52 = vrot.slane %v637_v45, %v4938_v43 }
 0x309   : > { %v652_v46 = vcombine.low %v628_v39, %v644_v40  ;;  %v653_v50 = vcombine.high %v628_v39, %v644_v40  ;;  %v654_v56 = vcombine.low %v635_v51, %v651_v52  ;;  %v655_v58 = vcombine.high %v635_v51, %v651_v52 }
 0x30b   : > { %4471 = vmatpush3.xpose.msk.msra.mxu1 %vm804_vm2, %v652_v46 }
 0x30c   : > { %4475 = vmatprep.subr.mxu1 %v4752_v8 }
 0x30e   : > { %4473 = vmatmul.mubr.msk.f32.vlgmr.msra.gmra.mxu1 %vm804_vm2, %v504_v47 }
 0x30f   : > { %4476 = vmatpush3.xpose.msk.msra.mxu1 %vm804_vm2, %v653_v50  ;;  %4477 = vmatprep.mubr.msk.f32.mxu1 %vm4753_vm1, %v4752_v8 }
 0x310   : > { %4480 = vmatprep.subr.mxu1 %v4752_v8 }
 0x312   : > { %4478 = vmatmul.mubr.msk.f32.vlgmr.msra.gmra.mxu1 %vm804_vm2, %v505_v53 }
 0x313   : > { %4481 = vmatpush3.xpose.msk.msra.mxu1 %vm804_vm2, %v654_v56  ;;  %4482 = vmatprep.mubr.msk.f32.mxu1 %vm4753_vm1, %v4752_v8 }
 0x314   : > { %4485 = vmatprep.subr.mxu1 %v4752_v8 }
 0x316   : > { %4483 = vmatmul.mubr.msk.f32.vlgmr.msra.gmra.mxu1 %vm804_vm2, %v506_v57 }
 0x317   : > { %4486 = vmatpush3.xpose.msk.msra.mxu1 %vm804_vm2, %v655_v58  ;;  %4487 = vmatprep.mubr.msk.f32.mxu1 %vm4753_vm1, %v4752_v8 }
 0x318   : > { %4495 = vmatprep.subr.mxu1 %v4752_v8 }
 0x31a   : > { %4488 = vmatmul.mubr.msk.f32.vlgmr.msra.gmra.mxu1 %vm804_vm2, %v507_v59 }
 0x31b   : > { %4497 = vmatprep.mubr.msk.f32.mxu1 %vm4753_vm1, %v4752_v8 }
 0x3ce   : > { %v877_v60 = vpop.f32.mrf.mxu1 }
 0x3cf   : > { %v1109_v61 = vsel %vm804_vm2, %v877_v60, -inf }
 0x3d0   : > { %1110 = vmax.xlane.f32.xlu1 %v1109_v61  ;;  %v4474_v62 = vpop.f32.mrf.mxu1 }
 0x3d2   : > { %v953_v63 = vpop.f32.mrf.mxu1 }
 0x3d3   : > { %v1112_v1 = vsel %vm804_vm2, %v953_v63, -inf }
 0x3d4   : > { %1113 = vmax.xlane.f32.xlu0 %v1112_v1  ;;  %v4479_v2 = vpop.f32.mrf.mxu1 }
 0x3d6   : > { %v1029_v3 = vpop.f32.mrf.mxu1 }
 0x3d7   : > { %v1115_v4 = vsel %vm804_vm2, %v1029_v3, -inf }
 0x3d8   : > { %1116 = vmax.xlane.f32.xlu1 %v1115_v4  ;;  %v4484_v5 = vpop.f32.mrf.mxu1 }
 0x3da   : > { %v1105_v6 = vpop.f32.mrf.mxu1 }
 0x3db   : > { %v1118_v12 = vsel %vm804_vm2, %v1105_v6, -inf }
 0x3dc   : > { %1119 = vmax.xlane.f32.xlu0 %v1118_v12  ;;  %v4489_v13 = vpop.f32.mrf.mxu1 }
 0x3e9   : > { %656 = vrot.lane.b32.xlu1 %v4898_v19, %s4760_s8 }
 0x3ed   : > { %660 = vrot.lane.b32.xlu1 %v4912_v22, %s4760_s8 }
 0x3f1   : > { %662 = vrot.lane.b32.xlu1 %v4916_v23, %s4760_s8 }
 0x3f2   : > { %658 = vrot.lane.b32.xlu0 %v4908_v21, %s4760_s8 }
 0x459   : > { %v1111_v14 = vpop.xlane.xlu1 %1110 }
 0x45a   : > { %v1121_v15 = vsub.f32 %v877_v60, %v1111_v14 }
 0x45c   : > { %v1125_v16 = vmul.f32 1.442695, %v1121_v15 }
 0x45d   : > { %v1114_v18 = vpop.xlane.xlu0 %1113 }
 0x45e   : > { %4648 = vpow2.f32 %v1125_v16  ;;  %v1122_v20 = vsub.f32 %v953_v63, %v1114_v18 }
 0x460   : > { %v1127_v24 = vmul.f32 1.442695, %v1122_v20 }
 0x461   : > { %v1117_v25 = vpop.xlane.xlu1 %1116 }
 0x462   : > { %4650 = vpow2.f32 %v1127_v24  ;;  %v1123_v26 = vsub.f32 %v1029_v3, %v1117_v25 }
 0x464   : > { %v1129_v19 = vmul.f32 1.442695, %v1123_v26 }
 0x465   : > { %v1120_v27 = vpop.xlane.xlu0 %1119  ;;  %v657_v33 = vpop.permute.xlu1 %656 }
 0x466   : > { %4652 = vpow2.f32 %v1129_v19  ;;  %v1124_v22 = vsub.f32 %v1105_v6, %v1120_v27 }
 0x468   : > { %v1131_v29 = vmul.f32 1.442695, %v1124_v22 }
 0x469   : > { %v661_v38 = vpop.permute.xlu1 %660  ;;  %v659_v40 = vpop.permute.xlu0 %658 }
 0x46a   : > { %4654 = vpow2.f32 %v1131_v29  ;;  %v668_v44 = vcombine.low %v657_v33, %v661_v38  ;;  %v669_v45 = vcombine.high %v657_v33, %v661_v38 }
 0x46b   : > { %v4649_v23 = vpop.eup %4648 }
 0x46c   : > { %v1133_v30 = vsel %vm804_vm2, %v4649_v23, 0.0  ;;  %v676_v48 = vrot.slane %v668_v44, %v4927_v34  ;;  %v683_v49 = vrot.slane %v669_v45, %v4927_v34 }
 0x46d   : > { %1134 = vadd.xlane.f32.xlu0 %v1133_v30  ;;  %v663_v39 = vpop.permute.xlu1 %662 }
 0x46e   : > { %v684_v41 = vcombine.low %v659_v40, %v663_v39  ;;  %v685_v42 = vcombine.high %v659_v40, %v663_v39 }
 0x46f   : > { %v4651_v21 = vpop.eup %4650 }
 0x470   : > { %v1136_v31 = vsel %vm804_vm2, %v4651_v21, 0.0  ;;  %v692_v46 = vrot.slane %v684_v41, %v4927_v34  ;;  %v699_v47 = vrot.slane %v685_v42, %v4927_v34 }
 0x471   : > { %1137 = vadd.xlane.f32.xlu1 %v1136_v31 }
 0x472   : > { %v700_v50 = vcombine.low %v676_v48, %v692_v46  ;;  %v701_v51 = vcombine.high %v676_v48, %v692_v46  ;;  %v716_v52 = vcombine.low %v683_v49, %v699_v47  ;;  %v717_v53 = vcombine.high %v683_v49, %v699_v47 }
 0x473   : > { %v5002_v32 = vpop.eup %4652 }
 0x474   : > { %v1139_v35 = vsel %vm804_vm2, %v5002_v32, 0.0  ;;  %v708_v54 = vrot.slane %v700_v50, %v4938_v43  ;;  %v715_v55 = vrot.slane %v701_v51, %v4938_v43  ;;  %v724_v56 = vrot.slane %v716_v52, %v4938_v43 }
 0x475   : > { %1140 = vadd.xlane.f32.xlu0 %v1139_v35  ;;  %v731_v57 = vrot.slane %v717_v53, %v4938_v43 }
 0x476   : > { %v736_v58 = vcombine.low %v708_v54, %v715_v55  ;;  %v4227_v59 = vcombine.high %v708_v54, %v715_v55 }
 0x477   : > { %v5006_v36 = vpop.eup %4654  ;;  %v752_v60 = vcombine.low %v724_v56, %v731_v57  ;;  %v4228_v61 = vcombine.high %v724_v56, %v731_v57 }
 0x478   : > { %v1142_v37 = vsel %vm804_vm2, %v5006_v36, 0.0  ;;  %v743_v62 = vrot.slane %v736_v58, %v4927_v34  ;;  %v751_v63 = vrot.slane %v4227_v59, %v4927_v34 }
 0x479   : > { %1143 = vadd.xlane.f32.xlu0 %v1142_v37  ;;  %v759_v1 = vrot.slane %v752_v60, %v4927_v34  ;;  %v767_v2 = vrot.slane %v4228_v61, %v4927_v34 }
 0x47a   : > { %v768_v3 = vcombine.low %v743_v62, %v751_v63  ;;  %v769_v12 = vcombine.high %v743_v62, %v751_v63 }
 0x47b   : > { %v784_v4 = vcombine.low %v759_v1, %v767_v2  ;;  %v785_v13 = vcombine.high %v759_v1, %v767_v2 }
 0x47c   : > { %v776_v5 = vrot.slane %v768_v3, %v4938_v43  ;;  %v783_v16 = vrot.slane %v769_v12, %v4938_v43 }
 0x47d   : > { %v792_v6 = vrot.slane %v784_v4, %v4938_v43  ;;  %v799_v18 = vrot.slane %v785_v13, %v4938_v43 }
 0x47f   : > { %v800_v14 = vcombine.low %v776_v5, %v792_v6  ;;  %v801_v15 = vcombine.high %v776_v5, %v792_v6  ;;  %v802_v20 = vcombine.low %v783_v16, %v799_v18  ;;  %v803_v24 = vcombine.high %v783_v16, %v799_v18 }
 0x4a4   : > { %1153 = vxpose.xlu1.b32.start.end [1/1] (short) (narrow) %v800_v14, 8 }
 0x4a6   : > { %1261 = vxpose.xlu0.b32.start.end [1/1] (short) (narrow) %v801_v15, 8 }
 0x4aa   : > { %1369 = vxpose.xlu0.b32.start.end [1/1] (short) (narrow) %v802_v20, 8 }
 0x4ae   : > { %1477 = vxpose.xlu0.b32.start.end [1/1] (short) (narrow) %v803_v24, 8 }
 0x4f6   : > { %v1135_v25 = vpop.xlane.xlu0 %1134 }
 0x4f7   : > { %4656 = vrcp.f32 %v1135_v25 }
 0x4fa   : > { %v1138_v26 = vpop.xlane.xlu1 %1137 }
 0x4fb   : > { %4658 = vrcp.f32 %v1138_v26 }
 0x4fe   : > { %v1141_v30 = vpop.xlane.xlu0 %1140 }
 0x4ff   : > { %4660 = vrcp.f32 %v1141_v30 }
 0x502   : > { %v1144_v31 = vpop.xlane.xlu0 %1143 }
 0x503   : > { %4662 = vrcp.f32 %v1144_v31 }
 0x504   : > { %v4657_v19 = vpop.eup %4656 }
 0x505   : > { %v1149_v27 = vmul.f32 %v4657_v19, %v4649_v23 }
 0x507   : > { %4491 = vmatpush3.xpose.msk.msra.mxu0 %vm804_vm2, %v1149_v27 }
 0x508   : > { %v4659_v22 = vpop.eup %4658  ;;  %4500 = vmatprep.subr.mxu0 %v4752_v8 }
 0x509   : > { %v1150_v29 = vmul.f32 %v4659_v22, %v4651_v21 }
 0x50b   : > { %4496 = vmatpush3.xpose.msk.msra.mxu1 %vm804_vm2, %v1150_v29 }
 0x50c   : > { %4505 = vmatprep.subr.mxu1 %v4752_v8  ;;  %v4661_v33 = vpop.eup %4660 }
 0x50d   : > { %v1151_v38 = vmul.f32 %v4661_v33, %v5002_v32 }
 0x510   : > { %v4663_v35 = vpop.eup %4662 }
 0x511   : > { %v1152_v21 = vmul.f32 %v4663_v35, %v5006_v36 }
 0x520   : > { %v1169_v37 = vpop.trf.xlu1 }
 0x521   : > { %4493 = vmatmul.mubr.msk.f32.vlgmr.msra.gmra.mxu0 %vm804_vm2, %v1169_v37 }
 0x522   : > { %4501 = vmatpush3.xpose.msk.msra.mxu0 %vm804_vm2, %v1151_v38  ;;  %4502 = vmatprep.mubr.msk.f32.mxu0 %vm4753_vm1, %v4752_v8  ;;  %v1277_v23 = vpop.trf.xlu0 }
 0x523   : > { %4510 = vmatprep.subr.mxu0 %v4752_v8  ;;  %4498 = vmatmul.mubr.msk.f32.vlgmr.msra.gmra.mxu1 %vm804_vm2, %v1277_v23 }
 0x524   : > { %4506 = vmatpush3.xpose.msk.msra.mxu1 %vm804_vm2, %v1152_v21  ;;  %4507 = vmatprep.mubr.msk.f32.mxu1 %vm4753_vm1, %v4752_v8 }
 0x526   : > { %v1385_v32 = vpop.trf.xlu0 }
 0x527   : > { %4503 = vmatmul.mubr.msk.f32.vlgmr.msra.gmra.mxu0 %vm804_vm2, %v1385_v32 }
 0x528   : > { %4518 = vmatprep.mubr.msk.f32.mxu0 %vm4753_vm1, %v4752_v8 }
 0x52a   : > { %v1493_v39 = vpop.trf.xlu0 }
 0x52b   : > { %4508 = vmatmul.mubr.msk.f32.vlgmr.msra.gmra.mxu1 %vm804_vm2, %v1493_v39 }
 0x52c   : > { %2051 = vmatprep.mubr.f32.mxu1 %v4752_v8 }
 0x5e1   : > { %v1257_v36 = vpop.f32.mrf.mxu0 }
 0x5e2   : > { %1585 = vxpose.xlu1.b32.start.end [1/1] (short) (narrow) %v1257_v36, 8 }
 0x5e3   : > { %v4494_v40 = vpop.f32.mrf.mxu0  ;;  %v1365_v41 = vpop.f32.mrf.mxu1 }
 0x5e4   : > { %1617 = vxpose.xlu0.b32.start.end [1/1] (short) (narrow) %v1365_v41, 8 }
 0x5e5   : > { %v4499_v42 = vpop.f32.mrf.mxu1 }
 0x5e7   : > { %v1473_v44 = vpop.f32.mrf.mxu0 }
 0x5e8   : > { %1649 = vxpose.xlu1.b32.start.end [1/1] (short) (narrow) %v1473_v44, 8 }
 0x5e9   : > { %v4504_v45 = vpop.f32.mrf.mxu0 }
 0x5eb   : > { %v1581_v46 = vpop.f32.mrf.mxu1 }
 0x5ec   : > { %1681 = vxpose.xlu0.b32.start.end [1/1] (short) (narrow) %v1581_v46, 8 }
 0x5ed   : > { %v4509_v47 = vpop.f32.mrf.mxu1 }
 0x606   : > { %1876 = vrot.lane.b32.xlu1 %v4858_v7, %s4761_s9 }
 0x60a   : > { %1872 = vrot.lane.b32.xlu1 %v4874_v10, %s4761_s9 }
 0x615   : > { %1874 = vrot.lane.b32.xlu0 %v4864_v9, %s4761_s9 }
 0x619   : > { %1870 = vrot.lane.b32.xlu0 %v4883_v11, %s4761_s9 }
 0x65e   : > { %v1601_v48 = vpop.trf.xlu1 }
 0x660   : > { %v1633_v49 = vpop.trf.xlu0 }
 0x664   : > { %v1665_v50 = vpop.trf.xlu1 }
 0x665   : > { %v1713_v51 = vcombine.low %v1601_v48, %v1665_v50  ;;  %v1714_v52 = vcombine.high %v1601_v48, %v1665_v50  ;;  %v231_v50 = vld [vmem:[%s5661_s1 + $0x50] sm:$0xff] }
 0x667   : > { %v1721_v56 = vrot.slane %v1713_v51, %v4927_v34  ;;  %v1728_v7 = vrot.slane %v1714_v52, %v4927_v34  ;;  %v230_v51 = vld [vmem:[%s5661_s1 + $0x40] sm:$0xff]  ;;  %v229_v52 = vld [vmem:[%s5661_s1 + $0x38] sm:$0xff] }
 0x668   : > { %v1697_v53 = vpop.trf.xlu0 }
 0x669   : > { %v1729_v54 = vcombine.low %v1633_v49, %v1697_v53  ;;  %v1730_v55 = vcombine.high %v1633_v49, %v1697_v53  ;;  %v228_v53 = vld [vmem:[%s5661_s1 + $0x28] sm:$0xff] }
 0x66b   : > { %v1737_v10 = vrot.slane %v1729_v54, %v4927_v34  ;;  %v1744_v57 = vrot.slane %v1730_v55, %v4927_v34  ;;  %v227_v54 = vld [vmem:[%s5661_s1 + $0x20] sm:$0xff]  ;;  %v226_v55 = vld [vmem:[%s5661_s1 + $0x10] sm:$0xff] }
 0x66d   : > { %v1745_v9 = vcombine.low %v1721_v56, %v1737_v10  ;;  %v1746_v58 = vcombine.high %v1721_v56, %v1737_v10  ;;  %v1761_v59 = vcombine.low %v1728_v7, %v1744_v57  ;;  %v1762_v11 = vcombine.high %v1728_v7, %v1744_v57  ;;  %v225_v56 = vld [vmem:[%s5661_s1 + $0x8] sm:$0xff]  ;;  %v264_v7 = vld [vmem:[%s5662_s2 + $0xf8] sm:$0xff]  ;;  %v263_v57 = vld [vmem:[%s5662_s2 + $0xf0] sm:$0xff] }
 0x66e   : > { %v248_v10 = vld [vmem:[%s5662_s2 + $0x78] sm:$0xff] }
 0x66f   : > { %v1753_v60 = vrot.slane %v1745_v9, %v4938_v43  ;;  %v1760_v61 = vrot.slane %v1746_v58, %v4938_v43  ;;  %v1769_v62 = vrot.slane %v1761_v59, %v4938_v43  ;;  %v1776_v63 = vrot.slane %v1762_v11, %v4938_v43  ;;  %v247_v9 = vld [vmem:[%s5662_s2 + $0x70] sm:$0xff]  ;;  %v262_v58 = vld [vmem:[%s5662_s2 + $0xe8] sm:$0xff]  ;;  %v261_v11 = vld [vmem:[%s5662_s2 + $0xe0] sm:$0xff] }
 0x670   : > { %v246_v59 = vld [vmem:[%s5662_s2 + $0x68] sm:$0xff] }
 0x671   : > { %v1781_v1 = vcombine.low %v1753_v60, %v1760_v61  ;;  %v4245_v2 = vcombine.high %v1753_v60, %v1760_v61  ;;  %v1797_v3 = vcombine.low %v1769_v62, %v1776_v63  ;;  %v4246_v4 = vcombine.high %v1769_v62, %v1776_v63  ;;  %v245_v60 = vld [vmem:[%s5662_s2 + $0x60] sm:$0xff]  ;;  %v260_v61 = vld [vmem:[%s5662_s2 + $0xd8] sm:$0xff]  ;;  %v259_v63 = vld [vmem:[%s5662_s2 + $0xd0] sm:$0xff] }
 0x672   : > { %v244_v62 = vld [vmem:[%s5662_s2 + $0x58] sm:$0xff] }
 0x673   : > { %v1788_v5 = vrot.slane %v1781_v1, %v4927_v34  ;;  %v1796_v6 = vrot.slane %v4245_v2, %v4927_v34  ;;  %v1804_v12 = vrot.slane %v1797_v3, %v4927_v34  ;;  %v1812_v13 = vrot.slane %v4246_v4, %v4927_v34  ;;  %v243_v1 = vld [vmem:[%s5662_s2 + $0x50] sm:$0xff]  ;;  %v258_v2 = vld [vmem:[%s5662_s2 + $0xc8] sm:$0xff]  ;;  %v257_v4 = vld [vmem:[%s5662_s2 + $0xc0] sm:$0xff] }
 0x674   : > { %v242_v3 = vld [vmem:[%s5662_s2 + $0x48] sm:$0xff] }
 0x675   : > { %v1813_v14 = vcombine.low %v1788_v5, %v1796_v6  ;;  %v1829_v15 = vcombine.low %v1804_v12, %v1812_v13  ;;  %v1814_v16 = vcombine.high %v1788_v5, %v1796_v6  ;;  %v1830_v18 = vcombine.high %v1804_v12, %v1812_v13  ;;  %v241_v5 = vld [vmem:[%s5662_s2 + $0x40] sm:$0xff]  ;;  %v256_v6 = vld [vmem:[%s5662_s2 + $0xb8] sm:$0xff]  ;;  %v255_v13 = vld [vmem:[%s5662_s2 + $0xb0] sm:$0xff] }
 0x676   : > { %v240_v12 = vld [vmem:[%s5662_s2 + $0x38] sm:$0xff] }
 0x677   : > { %v1821_v20 = vrot.slane %v1813_v14, %v4938_v43  ;;  %v1837_v24 = vrot.slane %v1829_v15, %v4938_v43  ;;  %v1828_v19 = vrot.slane %v1814_v16, %v4938_v43  ;;  %v1844_v27 = vrot.slane %v1830_v18, %v4938_v43  ;;  %v239_v14 = vld [vmem:[%s5662_s2 + $0x30] sm:$0xff]  ;;  %v254_v15 = vld [vmem:[%s5662_s2 + $0xa8] sm:$0xff]  ;;  %v253_v18 = vld [vmem:[%s5662_s2 + $0xa0] sm:$0xff] }
 0x678   : > { %v1877_v25 = vpop.permute.xlu1 %1876  ;;  %v238_v16 = vld [vmem:[%s5662_s2 + $0x28] sm:$0xff] }
 0x679   : > { %v1846_v26 = vcombine.high %v1821_v20, %v1837_v24  ;;  %4511 = vmatpush3.msra.mxu0 %v1877_v25  ;;  %v1845_v22 = vcombine.low %v1821_v20, %v1837_v24  ;;  %v1847_v29 = vcombine.low %v1828_v19, %v1844_v27  ;;  %v1848_v30 = vcombine.high %v1828_v19, %v1844_v27  ;;  %v237_v20 = vld [vmem:[%s5662_s2 + $0x20] sm:$0xff] }
 0x67a   : > { %4512 = vmatprep.subr.mxu0 %v4752_v8 }
 0x67b   : > { %1850 = vrot.lane.b32.xlu1 %v1846_v26, %s5667_s10 }
 0x67c   : > { %v1873_v33 = vpop.permute.xlu1 %1872 }
 0x67f   : > { %1854 = vrot.lane.b32.xlu1 %v1847_v29, %s5666_s11  ;;  %v236_v29 = vld [vmem:[%s5662_s2 + $0x18] sm:$0xff] }
 0x683   : > { %1858 = vrot.lane.b32.xlu1 %v1848_v30, %s5668_s12  ;;  %v251_v30 = vld [vmem:[%s5662_s2 + $0x90] sm:$0xff] }
 0x687   : > { %v1875_v31 = vpop.permute.xlu0 %1874  ;;  %1956 = vrot.lane.b32.xlu1 %v4895_v17, %s4761_s9 }
 0x688   : > { %4513 = vmatpush3.msra.mxu0 %v1875_v31  ;;  %v235_v31 = vld [vmem:[%s5662_s2 + $0x10] sm:$0xff] }
 0x689   : > { %4514 = vmatprep.subr.mxu0 %v4752_v8 }
 0x68a   : > { %4515 = vmatpush3.msra.mxu0 %v1873_v33  ;;  %v250_v33 = vld [vmem:[%s5662_s2 + $0x88] sm:$0xff] }
 0x68b   : > { %4516 = vmatprep.subr.mxu0 %v4752_v8  ;;  %v1871_v35 = vpop.permute.xlu0 %1870 }
 0x68c   : > { %4517 = vmatpush3.msra.mxu0 %v1871_v35  ;;  %v234_v35 = vld [vmem:[%s5662_s2 + $0x8] sm:$0xff] }
 0x68d   : > { %4358 = vmatprep.subr.mxu0 %v264_v7 }
 0x6ed   : > { %v1851_v37 = vpop.permute.xlu1 %1850 }
 0x6ee   : > { %v1861_v23 = vsel %vm804_vm2, %v1845_v22, %v1851_v37  ;;  %v252_v22 = vld [vmem:[%s5662_s2 + $0x98] sm:$0xff]  ;;  %v249_v37 = vld [vmem:[%s5662_s2 + $0x80] sm:$0xff] }
 0x6f1   : > { %v1855_v38 = vpop.permute.xlu1 %1854 }
 0x6f2   : > { %v1863_v21 = vsel %vm1862_vm3, %v1861_v23, %v1855_v38  ;;  %v233_v38 = vld [vmem:[%s5662_s2] sm:$0xff]  ;;  %v1976_v23 = vsub.s32 0, %v4920_v28 }
 0x6f5   : > { %v1859_v32 = vpop.permute.xlu1 %1858 }
 0x6f6   : > { %v1865_v39 = vsel %vm1864_vm4, %v1863_v21, %v1859_v32  ;;  %v266_v21 = vld [vmem:[%s5663_s3 + $0x1] sm:$0x3]  ;;  %v1980_v32 = vsub.s32 1, %v4920_v28  ;;  %v4055_v28 = vld [vmem:[%s5664_s4 + $0x10] sm:$0xff] }
 0x6f7   : > { %4519 = vmatmul.mubr.msk.f32.vlgmr.msra.gmra.mxu0 %vm268_vm0, %v1865_v39  ;;  %v1977_v39 = vrot.slane %v266_v21, %v1976_v23 }
 0x6f8   : > { %4359 = vmatpush3.msra.mxu0 %v248_v10  ;;  %v5243_v10 = vld [vmem:[%s5661_s1 + $0xa8] sm:$0xff] }
 0x6f9   : > { %v1957_v36 = vpop.permute.xlu1 %1956  ;;  %4360 = vmatprep.subr.mxu0 %v263_v57  ;;  %v5255_v57 = vld [vmem:[%s5661_s1 + $0x78] sm:$0xff] }
 0x6fa   : > { %4361 = vmatpush3.msra.mxu0 %v247_v9  ;;  %v5262_v9 = vld [vmem:[%s5661_s1 + $0x60] sm:$0xff] }
 0x6fb   : > { %4362 = vmatprep.subr.mxu0 %v262_v58 }
 0x6fc   : > { %4363 = vmatpush3.msra.mxu0 %v246_v59 }
 0x6fd   : > { %4364 = vmatprep.subr.mxu0 %v261_v11 }
 0x6fe   : > { %4365 = vmatpush3.msra.mxu0 %v245_v60 }
 0x6ff   : > { %4366 = vmatprep.subr.mxu0 %v260_v61 }
 0x700   : > { %4367 = vmatpush3.msra.mxu0 %v244_v62  ;;  %v5274_v62 = vld [vmem:[%s5663_s3 + $0x4] ss:$0 sm:$0xff] }
 0x701   : > { %4368 = vmatprep.subr.mxu0 %v259_v63 }
 0x702   : > { %4369 = vmatpush3.msra.mxu0 %v243_v1 }
 0x703   : > { %4370 = vmatprep.subr.mxu0 %v258_v2 }
 0x704   : > { %4371 = vmatpush3.msra.mxu0 %v242_v3 }
 0x705   : > { %4372 = vmatprep.subr.mxu0 %v257_v4 }
 0x706   : > { %4373 = vmatpush3.msra.mxu0 %v241_v5 }
 0x707   : > { %4374 = vmatprep.subr.mxu0 %v256_v6 }
 0x708   : > { %4375 = vmatpush3.msra.mxu0 %v240_v12 }
 0x709   : > { %4376 = vmatprep.subr.mxu0 %v255_v13 }
 0x70a   : > { %4377 = vmatpush3.msra.mxu0 %v239_v14 }
 0x70b   : > { %4378 = vmatprep.subr.mxu0 %v254_v15 }
 0x70c   : > { %4379 = vmatpush3.msra.mxu0 %v238_v16 }
 0x70d   : > { %4380 = vmatprep.subr.mxu0 %v253_v18 }
 0x70e   : > { %4381 = vmatpush3.msra.mxu0 %v237_v20 }
 0x70f   : > { %4382 = vmatprep.subr.mxu0 %v252_v22 }
 0x710   : > { %4383 = vmatpush3.msra.mxu0 %v236_v29 }
 0x711   : > { %4384 = vmatprep.subr.mxu0 %v251_v30 }
 0x712   : > { %4385 = vmatpush3.msra.mxu0 %v235_v31 }
 0x713   : > { %4386 = vmatprep.subr.mxu0 %v250_v33 }
 0x714   : > { %4387 = vmatpush3.msra.mxu0 %v234_v35 }
 0x715   : > { %4388 = vmatprep.subr.mxu0 %v249_v37 }
 0x716   : > { %4389 = vmatpush3.msra.mxu0 %v233_v38 }
 0x717   : > { %4562 = vmatprep.subr.mxu0 %v4752_v8 }
 0x7b7   : > { %v1951_v17 = vpop.f32.mrf.mxu0 }
 0x7b8   : > { %v1955_v40 = vadd.f32 %v1951_v17, %v4849_v0  ;;  %v232_v0 = vld [vmem:[%s5661_s1 + $0x58] sm:$0xff]  ;;  %v1981_v17 = vrot.slane %v266_v21, %v1980_v32 }
 0x7b9   : > { %v4520_v41 = vpop.f32.mrf.mxu0  ;;  %2011 = vmatprep.subr.mxu1 %v232_v0  ;;  %v4249_v0 = vld [vmem:[%s5663_s3 + $0x3] ss:$0 sm:$0xff] }
 0x7ba   : > { %v5083_v42 = vadd.f32 %v1957_v36, %v1955_v40  ;;  %2012 = vmatpush1.msra.mxu1 %v231_v50 }
 0x7bb   : > { %2013 = vmatprep.subr.mxu1 %v230_v51 }
 0x7bc   : > { %v1960_v44 = vsel %vm268_vm0, %v5083_v42, 0.0  ;;  %2014 = vmatpush1.msra.mxu1 %v229_v52 }
 0x7bd   : > { %1961 = vadd.xlane.f32.xlu0 %v1960_v44  ;;  %2015 = vmatprep.subr.mxu1 %v228_v53 }
 0x7be   : > { %2016 = vmatpush1.msra.mxu1 %v227_v54 }
 0x7bf   : > { %2017 = vmatprep.subr.mxu1 %v226_v55 }
 0x7c0   : > { %2018 = vmatpush1.msra.mxu1 %v225_v56 }
 0x7c1   : > { %4521 = vmatprep.subr.mxu1 %v4752_v8 }
 0x846   : > { %v1962_v45 = vpop.xlane.xlu0 %1961 }
 0x847   : > { %v1963_v46 = vmul.f32 0.03125, %v1962_v45 }
 0x849   : > { %v5088_v47 = vsub.f32 %v5083_v42, %v1963_v46 }
 0x84b   : > { %v1965_v48 = vmul.f32 %v5088_v47, %v5088_v47 }
 0x84d   : > { %v1966_v49 = vsel %vm268_vm0, %v1965_v48, 0.0 }
 0x84e   : > { %1967 = vadd.xlane.f32.xlu1 %v1966_v49 }
 0x8d7   : > { %v1968_v24 = vpop.xlane.xlu1 %1967 }
 0x8d8   : > { %v1969_v25 = vmul.f32 0.03125, %v1968_v24 }
 0x8da   : > { %v1970_v26 = vadd.f32 1e-05, %v1969_v25 }
 0x8dc   : > { %4664 = vrsqrt.f32 %v1970_v26 }
 0x8e9   : > { %v4665_v19 = vpop.eup %4664 }
 0x8ea   : > { %v1972_v27 = vmul.f32 %v4665_v19, %v5088_v47 }
 0x8ec   : > { %4248 = vmatmul.mubr.msk.f32.vlgmr.msra.gmra.mxu1 %vm268_vm0, %v1972_v27 }
 0x8ed   : > { %4529 = vmatprep.mubr.msk.f32.mxu1 %vm4753_vm1, %v4752_v8  ;;  %4522 = vmatpush3.msra.mxu1 %v5243_v10 }
 0x8ee   : > { %4523 = vmatprep.subr.mxu1 %v4752_v8 }
 0x9ac   : > { %v2053_v36 = vpop.f32.mrf.mxu1 }
 0x9ad   : > { %v2054_v40 = vadd.f32 %v2053_v36, %v1977_v39 }
 0x9ae   : > { %v2055_v41 = vpop.f32.mrf.mxu1 }
 0x9af   : > { %v2056_v44 = vadd.f32 %v2055_v41, %v1981_v17  ;;  %v2058_v46 = vmax.f32 %v2054_v40, 0.0 }
 0x9b1   : > { %v2059_v45 = vmax.f32 %v2056_v44, 0.0 }
 0x9b3   : > { %2124 = vmatprep.mubr.f32.mxu0 %v2059_v45 }
 0x9b4   : > { %2125 = vmatmul.mubr.f32.vlgmr.msra.gmra.mxu0 %v2058_v46 }
 0x9b5   : > { %4564 = vmatprep.mubr.msk.f32.mxu0 %vm4753_vm1, %v4752_v8 }
 0xa74   : > { %v4390_v47 = vpop.f32.mrf.mxu0 }
 0xa76   : > { %v4391_v48 = vpop.f32.mrf.mxu0 }
 0xa77   : > { %v4392_v49 = vadd.f32 %v4391_v48, %v4390_v47 }
 0xa79   : > { %v2130_v50 = vadd.f32 %v4392_v49, %v5083_v42  ;;  %v5248_v42 = vld [vmem:[%s5661_s1 + $0x90] sm:$0xff] }
 0xa7a   : > { %4524 = vmatpush3.msra.mxu1 %v5248_v42 }
 0xa7b   : > { %v5234_v51 = vadd.f32 %v4249_v0, %v2130_v50  ;;  %4525 = vmatprep.subr.mxu1 %v4752_v8 }
 0xa7c   : > { %4526 = vmatpush3.msra.mxu1 %v5255_v57 }
 0xa7d   : > { %v2188_v52 = vsel %vm268_vm0, %v5234_v51, 0.0  ;;  %4527 = vmatprep.subr.mxu1 %v4752_v8 }
 0xa7e   : > { %2189 = vadd.xlane.f32.xlu0 %v2188_v52  ;;  %4528 = vmatpush3.msra.mxu1 %v5262_v9 }
 0xa7f   : > { %4532 = vmatprep.subr.mxu1 %v4752_v8 }
 0xb07   : > { %v2190_v53 = vpop.xlane.xlu0 %2189 }
 0xb08   : > { %v2191_v54 = vmul.f32 0.03125, %v2190_v53 }
 0xb0a   : > { %v2192_v55 = vsub.f32 %v5234_v51, %v2191_v54 }
 0xb0c   : > { %v2193_v56 = vmul.f32 %v2192_v55, %v2192_v55 }
 0xb0e   : > { %v2194_v7 = vsel %vm268_vm0, %v2193_v56, 0.0 }
 0xb0f   : > { %2195 = vadd.xlane.f32.xlu0 %v2194_v7 }
 0xb98   : > { %v2196_v58 = vpop.xlane.xlu0 %2195 }
 0xb99   : > { %v2197_v59 = vmul.f32 0.03125, %v2196_v58 }
 0xb9b   : > { %v2198_v11 = vadd.f32 1e-05, %v2197_v59 }
 0xb9d   : > { %4666 = vrsqrt.f32 %v2198_v11 }
 0xbaa   : > { %v4667_v60 = vpop.eup %4666 }
 0xbab   : > { %v2200_v61 = vmul.f32 %v4667_v60, %v2192_v55 }
 0xbad   : > { %4530 = vmatmul.mubr.msk.f32.vlgmr.msra.gmra.mxu1 %vm268_vm0, %v2200_v61 }
 0xbae   : > { %4534 = vmatprep.mubr.msk.f32.mxu1 %vm4753_vm1, %v4752_v8 }
 0xc6d   : > { %v2276_v63 = vpop.f32.mrf.mxu1 }
 0xc6e   : > { %v5277_v1 = vadd.f32 %v5274_v62, %v2276_v63 }
 0xc6f   : > { %v4531_v2 = vpop.f32.mrf.mxu1 }
 0xc70   : > { %2284 = vrot.lane.b32.xlu0 %v5277_v1, %s4756_s6  ;;  %2281 = vrot.lane.b32.xlu1 %v5277_v1, %s4755_s30  ;;  %s5672_s30 = smov 8   ;;  %s5673_s6 = smov 16  }
 0xc74   : > { %2287 = vrot.lane.b32.xlu1 %v5277_v1, %s4754_s26  ;;  %s5671_s26 = smov 24  }
 0xc78   : > { %2426 = vrot.lane.b32.xlu1 %v5277_v1, %s4757_s7 }
 0xce2   : > { %v5287_v3 = vpop.permute.xlu0 %2284  ;;  %v5289_v4 = vpop.permute.xlu1 %2281 }
 0xce3   : > { %2430 = vrot.lane.b32.xlu1 %v5287_v3, %s4757_s7  ;;  %2428 = vrot.lane.b32.xlu0 %v5289_v4, %s4757_s7  ;;  %v2290_v13 = vcombine.low %v5277_v1, %v5287_v3  ;;  %v2291_v14 = vcombine.high %v5277_v1, %v5287_v3 }
 0xce5   : > { %v2298_v20 = vrot.slane %v2290_v13, %v4927_v34  ;;  %v2305_v24 = vrot.slane %v2291_v14, %v4927_v34 }
 0xce6   : > { %v5295_v5 = vpop.permute.xlu1 %2287 }
 0xce7   : > { %2432 = vrot.lane.b32.xlu0 %v5295_v5, %s4757_s7  ;;  %v2306_v6 = vcombine.low %v5289_v4, %v5295_v5  ;;  %v2307_v12 = vcombine.high %v5289_v4, %v5295_v5  ;;  %s4329_s7 = sshll.u32 %s4817_s22, 7  ;;  %s4696_s22 = scalar_lea.vmem %s4695_s13, 256 }
 0xce8   : > { %s5624_s10 = scalar_lea.hbm %s5665_s5, %s4329_s7 }
 0xce9   : > { %v2314_v15 = vrot.slane %v2306_v6, %v4927_v34  ;;  %v2321_v16 = vrot.slane %v2307_v12, %v4927_v34 }
 0xcea   : > { %v2427_v18 = vpop.permute.xlu1 %2426 }
 0xceb   : > { %v2322_v25 = vcombine.low %v2298_v20, %v2314_v15  ;;  %v2323_v26 = vcombine.high %v2298_v20, %v2314_v15  ;;  %v2338_v19 = vcombine.low %v2305_v24, %v2321_v16  ;;  %v2339_v27 = vcombine.high %v2305_v24, %v2321_v16 }
 0xced   : > { %v2330_v33 = vrot.slane %v2322_v25, %v4938_v43  ;;  %v2337_v35 = vrot.slane %v2323_v26, %v4938_v43  ;;  %v2346_v37 = vrot.slane %v2338_v19, %v4938_v43  ;;  %v2353_v38 = vrot.slane %v2339_v27, %v4938_v43 }
 0xcef   : > { %v2358_v45 = vcombine.low %v2330_v33, %v2337_v35  ;;  %v4299_v46 = vcombine.high %v2330_v33, %v2337_v35  ;;  %v2374_v47 = vcombine.low %v2346_v37, %v2353_v38  ;;  %v4300_v48 = vcombine.high %v2346_v37, %v2353_v38 }
 0xcf1   : > { %v2365_v7 = vrot.slane %v2358_v45, %v4927_v34  ;;  %v2373_v58 = vrot.slane %v4299_v46, %v4927_v34  ;;  %v2381_v59 = vrot.slane %v2374_v47, %v4927_v34  ;;  %v2389_v11 = vrot.slane %v4300_v48, %v4927_v34 }
 0xcf3   : > { %v2390_v15 = vcombine.low %v2365_v7, %v2373_v58  ;;  %v2406_v16 = vcombine.low %v2381_v59, %v2389_v11  ;;  %v2407_v33 = vcombine.high %v2381_v59, %v2389_v11 }
 0xcf5   : > { %v2398_v26 = vrot.slane %v2390_v15, %v4938_v43  ;;  %v2414_v19 = vrot.slane %v2406_v16, %v4938_v43 }
 0xd55   : > { %v2429_v22 = vpop.permute.xlu0 %2428  ;;  %v2431_v29 = vpop.permute.xlu1 %2430 }
 0xd56   : > { %v2438_v30 = vcombine.low %v2427_v18, %v2431_v29  ;;  %v2439_v31 = vcombine.high %v2427_v18, %v2431_v29 }
 0xd58   : > { %v2446_v36 = vrot.slane %v2438_v30, %v4927_v34  ;;  %v2453_v40 = vrot.slane %v2439_v31, %v4927_v34  ;;  %v2422_v30 = vcombine.low %v2398_v26, %v2414_v19  ;;  %v2391_v31 = vcombine.high %v2365_v7, %v2373_v58 }
 0xd59   : > { %v2433_v21 = vpop.permute.xlu0 %2432 }
 0xd5a   : > { %v2454_v39 = vcombine.low %v2429_v22, %v2433_v21  ;;  %v2455_v17 = vcombine.high %v2429_v22, %v2433_v21  ;;  %v2423_v21 = vcombine.high %v2398_v26, %v2414_v19 }
 0xd5c   : > { %v2462_v41 = vrot.slane %v2454_v39, %v4927_v34  ;;  %v2469_v44 = vrot.slane %v2455_v17, %v4927_v34  ;;  %v2405_v39 = vrot.slane %v2391_v31, %v4938_v43  ;;  %v2421_v17 = vrot.slane %v2407_v33, %v4938_v43 }
 0xd5e   : > { %v2470_v49 = vcombine.low %v2446_v36, %v2462_v41  ;;  %v2471_v0 = vcombine.high %v2446_v36, %v2462_v41  ;;  %v2486_v50 = vcombine.low %v2453_v40, %v2469_v44  ;;  %v2487_v52 = vcombine.high %v2453_v40, %v2469_v44 }
 0xd5f   : > { %v2424_v40 = vcombine.low %v2405_v39, %v2421_v17  ;;  %v2425_v44 = vcombine.high %v2405_v39, %v2421_v17 }
 0xd60   : > { %v2478_v53 = vrot.slane %v2470_v49, %v4938_v43  ;;  %v2485_v54 = vrot.slane %v2471_v0, %v4938_v43  ;;  %v2494_v55 = vrot.slane %v2486_v50, %v4938_v43  ;;  %v2501_v56 = vrot.slane %v2487_v52, %v4938_v43 }
 0xd62   : > { %v2506_v60 = vcombine.low %v2478_v53, %v2485_v54  ;;  %v4301_v61 = vcombine.high %v2478_v53, %v2485_v54  ;;  %v2522_v63 = vcombine.low %v2494_v55, %v2501_v56  ;;  %v4302_v2 = vcombine.high %v2494_v55, %v2501_v56 }
 0xd64   : > { %v2513_v6 = vrot.slane %v2506_v60, %v4927_v34  ;;  %v2521_v12 = vrot.slane %v4301_v61, %v4927_v34  ;;  %v2529_v13 = vrot.slane %v2522_v63, %v4927_v34  ;;  %v2537_v14 = vrot.slane %v4302_v2, %v4927_v34 }
 0xd66   : > { %v2538_v18 = vcombine.low %v2513_v6, %v2521_v12  ;;  %v2554_v20 = vcombine.low %v2529_v13, %v2537_v14  ;;  %v2539_v27 = vcombine.high %v2513_v6, %v2521_v12  ;;  %v2555_v22 = vcombine.high %v2529_v13, %v2537_v14 }
 0xd68   : > { %v2546_v24 = vrot.slane %v2538_v18, %v4938_v43  ;;  %v2562_v25 = vrot.slane %v2554_v20, %v4938_v43  ;;  %v2553_v37 = vrot.slane %v2539_v27, %v4938_v43  ;;  %v2569_v38 = vrot.slane %v2555_v22, %v4938_v43 }
 0xd6a   : > { %v2570_v29 = vcombine.low %v2546_v24, %v2562_v25  ;;  %v2571_v35 = vcombine.high %v2546_v24, %v2562_v25  ;;  %v2572_v36 = vcombine.low %v2553_v37, %v2569_v38  ;;  %v2573_v41 = vcombine.high %v2553_v37, %v2569_v38 }
 0xd6c   : > { %4533 = vmatpush3.xpose.msk.msra.mxu1 %vm804_vm2, %v2570_v29 }
 0xd6d   : > { %4537 = vmatprep.subr.mxu1 %v4752_v8 }
 0xd6f   : > { %4535 = vmatmul.mubr.msk.f32.vlgmr.msra.gmra.mxu1 %vm804_vm2, %v2422_v30 }
 0xd70   : > { %4538 = vmatpush3.xpose.msk.msra.mxu1 %vm804_vm2, %v2571_v35  ;;  %4539 = vmatprep.mubr.msk.f32.mxu1 %vm4753_vm1, %v4752_v8 }
 0xd71   : > { %4542 = vmatprep.subr.mxu1 %v4752_v8 }
 0xd73   : > { %4540 = vmatmul.mubr.msk.f32.vlgmr.msra.gmra.mxu1 %vm804_vm2, %v2423_v21 }
 0xd74   : > { %4543 = vmatpush3.xpose.msk.msra.mxu1 %vm804_vm2, %v2572_v36  ;;  %4544 = vmatprep.mubr.msk.f32.mxu1 %vm4753_vm1, %v4752_v8 }
 0xd75   : > { %4547 = vmatprep.subr.mxu1 %v4752_v8 }
 0xd77   : > { %4545 = vmatmul.mubr.msk.f32.vlgmr.msra.gmra.mxu1 %vm804_vm2, %v2424_v40 }
 0xd78   : > { %4548 = vmatpush3.xpose.msk.msra.mxu1 %vm804_vm2, %v2573_v41  ;;  %4549 = vmatprep.mubr.msk.f32.mxu1 %vm4753_vm1, %v4752_v8 }
 0xd79   : > { %4552 = vmatprep.subr.mxu1 %v4752_v8 }
 0xd7b   : > { %4550 = vmatmul.mubr.msk.f32.vlgmr.msra.gmra.mxu1 %vm804_vm2, %v2425_v44 }
 0xd7c   : > { %4554 = vmatprep.mubr.msk.f32.mxu1 %vm4753_vm1, %v4752_v8 }
 0xe2f   : > { %v2794_v45 = vpop.f32.mrf.mxu1 }
 0xe30   : > { %v3026_v46 = vsel %vm804_vm2, %v2794_v45, -inf }
 0xe31   : > { %3027 = vmax.xlane.f32.xlu1 %v3026_v46  ;;  %v4536_v47 = vpop.f32.mrf.mxu1 }
 0xe33   : > { %v2870_v48 = vpop.f32.mrf.mxu1 }
 0xe34   : > { %v3029_v49 = vsel %vm804_vm2, %v2870_v48, -inf }
 0xe35   : > { %3030 = vmax.xlane.f32.xlu0 %v3029_v49  ;;  %v4541_v0 = vpop.f32.mrf.mxu1 }
 0xe37   : > { %v2946_v50 = vpop.f32.mrf.mxu1 }
 0xe38   : > { %v3032_v52 = vsel %vm804_vm2, %v2946_v50, -inf }
 0xe39   : > { %3033 = vmax.xlane.f32.xlu0 %v3032_v52  ;;  %v4546_v53 = vpop.f32.mrf.mxu1 }
 0xe3b   : > { %v3022_v54 = vpop.f32.mrf.mxu1 }
 0xe3c   : > { %v3035_v55 = vsel %vm804_vm2, %v3022_v54, -inf }
 0xe3d   : > { %3036 = vmax.xlane.f32.xlu1 %v3035_v55  ;;  %v4551_v56 = vpop.f32.mrf.mxu1 }
 0xe4e   : > { %2576 = vrot.lane.b32.xlu1 %v5289_v4, %s4760_s8 }
 0xe4f   : > { %2574 = vrot.lane.b32.xlu0 %v5277_v1, %s4760_s8 }
 0xe52   : > { %2578 = vrot.lane.b32.xlu1 %v5287_v3, %s4760_s8 }
 0xe53   : > { %2580 = vrot.lane.b32.xlu0 %v5295_v5, %s4760_s8 }
 0xeba   : > { %v3028_v7 = vpop.xlane.xlu1 %3027 }
 0xebb   : > { %v3038_v58 = vsub.f32 %v2794_v45, %v3028_v7 }
 0xebd   : > { %v3042_v59 = vmul.f32 1.442695, %v3038_v58 }
 0xebe   : > { %v3031_v11 = vpop.xlane.xlu0 %3030 }
 0xebf   : > { %4668 = vpow2.f32 %v3042_v59  ;;  %v3039_v60 = vsub.f32 %v2870_v48, %v3031_v11 }
 0xec1   : > { %v3044_v61 = vmul.f32 1.442695, %v3039_v60 }
 0xec2   : > { %v3034_v63 = vpop.xlane.xlu0 %3033 }
 0xec3   : > { %4670 = vpow2.f32 %v3044_v61  ;;  %v3040_v2 = vsub.f32 %v2946_v50, %v3034_v63 }
 0xec5   : > { %v3046_v4 = vmul.f32 1.442695, %v3040_v2 }
 0xec6   : > { %v3037_v6 = vpop.xlane.xlu1 %3036  ;;  %v2575_v25 = vpop.permute.xlu0 %2574 }
 0xec7   : > { %4672 = vpow2.f32 %v3046_v4  ;;  %v3041_v1 = vsub.f32 %v3022_v54, %v3037_v6 }
 0xec9   : > { %v3048_v12 = vmul.f32 1.442695, %v3041_v1 }
 0xeca   : > { %v2577_v20 = vpop.permute.xlu1 %2576  ;;  %v2581_v19 = vpop.permute.xlu0 %2580 }
 0xecb   : > { %4674 = vpow2.f32 %v3048_v12  ;;  %v2602_v29 = vcombine.low %v2577_v20, %v2581_v19  ;;  %v2603_v30 = vcombine.high %v2577_v20, %v2581_v19 }
 0xecc   : > { %v4669_v3 = vpop.eup %4668 }
 0xecd   : > { %v3050_v13 = vsel %vm804_vm2, %v4669_v3, 0.0  ;;  %v2610_v35 = vrot.slane %v2602_v29, %v4927_v34  ;;  %v2617_v37 = vrot.slane %v2603_v30, %v4927_v34 }
 0xece   : > { %3051 = vadd.xlane.f32.xlu1 %v3050_v13  ;;  %v2579_v26 = vpop.permute.xlu1 %2578 }
 0xecf   : > { %v2586_v27 = vcombine.low %v2575_v25, %v2579_v26  ;;  %v2587_v22 = vcombine.high %v2575_v25, %v2579_v26 }
 0xed0   : > { %v5372_v5 = vpop.eup %4670 }
 0xed1   : > { %v3053_v14 = vsel %vm804_vm2, %v5372_v5, 0.0  ;;  %v2594_v31 = vrot.slane %v2586_v27, %v4927_v34  ;;  %v2601_v33 = vrot.slane %v2587_v22, %v4927_v34 }
 0xed2   : > { %3054 = vadd.xlane.f32.xlu0 %v3053_v14 }
 0xed3   : > { %v2618_v38 = vcombine.low %v2594_v31, %v2610_v35  ;;  %v2619_v21 = vcombine.high %v2594_v31, %v2610_v35  ;;  %v2634_v39 = vcombine.low %v2601_v33, %v2617_v37  ;;  %v2635_v17 = vcombine.high %v2601_v33, %v2617_v37 }
 0xed4   : > { %v4673_v15 = vpop.eup %4672 }
 0xed5   : > { %v3056_v16 = vsel %vm804_vm2, %v4673_v15, 0.0  ;;  %v2626_v36 = vrot.slane %v2618_v38, %v4938_v43  ;;  %v2633_v40 = vrot.slane %v2619_v21, %v4938_v43  ;;  %v2642_v41 = vrot.slane %v2634_v39, %v4938_v43 }
 0xed6   : > { %3057 = vadd.xlane.f32.xlu0 %v3056_v16  ;;  %v2649_v44 = vrot.slane %v2635_v17, %v4938_v43 }
 0xed7   : > { %v2654_v45 = vcombine.low %v2626_v36, %v2633_v40  ;;  %v4303_v46 = vcombine.high %v2626_v36, %v2633_v40 }
 0xed8   : > { %v5377_v18 = vpop.eup %4674  ;;  %v2670_v47 = vcombine.low %v2642_v41, %v2649_v44  ;;  %v4304_v48 = vcombine.high %v2642_v41, %v2649_v44 }
 0xed9   : > { %v3059_v24 = vsel %vm804_vm2, %v5377_v18, 0.0  ;;  %v2661_v49 = vrot.slane %v2654_v45, %v4927_v34  ;;  %v2669_v0 = vrot.slane %v4303_v46, %v4927_v34 }
 0xeda   : > { %3060 = vadd.xlane.f32.xlu1 %v3059_v24  ;;  %v2677_v50 = vrot.slane %v2670_v47, %v4927_v34  ;;  %v2685_v52 = vrot.slane %v4304_v48, %v4927_v34 }
 0xedb   : > { %v2686_v53 = vcombine.low %v2661_v49, %v2669_v0  ;;  %v2687_v7 = vcombine.high %v2661_v49, %v2669_v0 }
 0xedc   : > { %v2702_v54 = vcombine.low %v2677_v50, %v2685_v52  ;;  %v2703_v58 = vcombine.high %v2677_v50, %v2685_v52 }
 0xedd   : > { %v2694_v55 = vrot.slane %v2686_v53, %v4938_v43  ;;  %v2701_v11 = vrot.slane %v2687_v7, %v4938_v43 }
 0xede   : > { %v2710_v56 = vrot.slane %v2702_v54, %v4938_v43  ;;  %v2717_v60 = vrot.slane %v2703_v58, %v4938_v43 }
 0xee0   : > { %v2718_v59 = vcombine.low %v2694_v55, %v2710_v56  ;;  %v2720_v61 = vcombine.low %v2701_v11, %v2717_v60  ;;  %v2721_v63 = vcombine.high %v2701_v11, %v2717_v60  ;;  %v2719_v2 = vcombine.high %v2694_v55, %v2710_v56 }
 0xf03   : > { %3070 = vxpose.xlu0.b32.start.end [1/1] (short) (narrow) %v2718_v59, 8 }
 0xf07   : > { %3286 = vxpose.xlu0.b32.start.end [1/1] (short) (narrow) %v2720_v61, 8 }
 0xf0b   : > { %3394 = vxpose.xlu0.b32.start.end [1/1] (short) (narrow) %v2721_v63, 8 }
 0xf0d   : > { %3178 = vxpose.xlu1.b32.start.end [1/1] (short) (narrow) %v2719_v2, 8 }
 0xf57   : > { %v3052_v4 = vpop.xlane.xlu1 %3051 }
 0xf58   : > { %4676 = vrcp.f32 %v3052_v4 }
 0xf5b   : > { %v3055_v6 = vpop.xlane.xlu0 %3054 }
 0xf5f   : > { %v3058_v1 = vpop.xlane.xlu0 %3057 }
 0xf60   : > { %4678 = vrcp.f32 %v3058_v1 }
 0xf61   : > { %4680 = vrcp.f32 %v3055_v6 }
 0xf63   : > { %v3061_v20 = vpop.xlane.xlu1 %3060 }
 0xf64   : > { %4682 = vrcp.f32 %v3061_v20 }
 0xf65   : > { %v4677_v12 = vpop.eup %4676 }
 0xf66   : > { %v3066_v13 = vmul.f32 %v4677_v12, %v4669_v3 }
 0xf68   : > { %4553 = vmatpush3.xpose.msk.msra.mxu1 %vm804_vm2, %v3066_v13 }
 0xf69   : > { %4557 = vmatprep.subr.mxu1 %v4752_v8 }
 0xf6d   : > { %v4679_v14 = vpop.eup %4678 }
 0xf6e   : > { %v3068_v16 = vmul.f32 %v4679_v14, %v4673_v15  ;;  %v4681_v24 = vpop.eup %4680 }
 0xf6f   : > { %v3067_v26 = vmul.f32 %v4681_v24, %v5372_v5 }
 0xf70   : > { %4563 = vmatpush3.xpose.msk.msra.mxu0 %vm804_vm2, %v3068_v16 }
 0xf71   : > { %4572 = vmatprep.subr.mxu0 %v4752_v8  ;;  %v4683_v15 = vpop.eup %4682 }
 0xf72   : > { %v3069_v27 = vmul.f32 %v4683_v15, %v5377_v18 }
 0xf7f   : > { %v3086_v25 = vpop.trf.xlu0 }
 0xf80   : > { %4555 = vmatmul.mubr.msk.f32.vlgmr.msra.gmra.mxu1 %vm804_vm2, %v3086_v25 }
 0xf81   : > { %4558 = vmatpush3.xpose.msk.msra.mxu1 %vm804_vm2, %v3067_v26  ;;  %4559 = vmatprep.mubr.msk.f32.mxu1 %vm4753_vm1, %v4752_v8 }
 0xf82   : > { %4567 = vmatprep.subr.mxu1 %v4752_v8 }
 0xf83   : > { %v3302_v3 = vpop.trf.xlu0 }
 0xf84   : > { %4565 = vmatmul.mubr.msk.f32.vlgmr.msra.gmra.mxu0 %vm804_vm2, %v3302_v3 }
 0xf85   : > { %4580 = vmatprep.mubr.msk.f32.mxu0 %vm4753_vm1, %v4752_v8 }
 0xf87   : > { %v3410_v5 = vpop.trf.xlu0 }
 0xf89   : > { %v3194_v19 = vpop.trf.xlu1 }
 0xf8a   : > { %4560 = vmatmul.mubr.msk.f32.vlgmr.msra.gmra.mxu1 %vm804_vm2, %v3194_v19 }
 0xf8b   : > { %4568 = vmatpush3.xpose.msk.msra.mxu1 %vm804_vm2, %v3069_v27  ;;  %4569 = vmatprep.mubr.msk.f32.mxu1 %vm4753_vm1, %v4752_v8 }
 0xf8e   : > { %4570 = vmatmul.mubr.msk.f32.vlgmr.msra.gmra.mxu1 %vm804_vm2, %v3410_v5 }
 0xf8f   : > { %3966 = vmatprep.mubr.f32.mxu1 %v4752_v8 }
0x1040   : > { %v3174_v22 = vpop.f32.mrf.mxu1 }
0x1041   : > { %3502 = vxpose.xlu0.b32.start.end [1/1] (short) (narrow) %v3174_v22, 8 }
0x1042   : > { %v4556_v29 = vpop.f32.mrf.mxu1 }
0x1044   : > { %v3390_v30 = vpop.f32.mrf.mxu0 }
0x1045   : > { %3566 = vxpose.xlu0.b32.start.end [1/1] (short) (narrow) %v3390_v30, 8 }
0x1046   : > { %v4566_v31 = vpop.f32.mrf.mxu0 }
0x104a   : > { %v3282_v33 = vpop.f32.mrf.mxu1 }
0x104b   : > { %3534 = vxpose.xlu1.b32.start.end [1/1] (short) (narrow) %v3282_v33, 8 }
0x104c   : > { %v4561_v18 = vpop.f32.mrf.mxu1 }
0x104e   : > { %v3498_v35 = vpop.f32.mrf.mxu1 }
0x104f   : > { %3598 = vxpose.xlu1.b32.start.end [1/1] (short) (narrow) %v3498_v35, 8 }
0x1050   : > { %v4571_v37 = vpop.f32.mrf.mxu1 }
0x106d   : > { %3789 = vrot.lane.b32.xlu1 %v5248_v42, %s4761_s9 }
0x106e   : > { %3791 = vrot.lane.b32.xlu0 %v5243_v10, %s4761_s9 }
0x1071   : > { %3787 = vrot.lane.b32.xlu1 %v5255_v57, %s4761_s9 }
0x10bd   : > { %v3518_v38 = vpop.trf.xlu0 }
0x10c1   : > { %v3582_v39 = vpop.trf.xlu0 }
0x10c2   : > { %v3630_v17 = vcombine.low %v3518_v38, %v3582_v39  ;;  %v3631_v36 = vcombine.high %v3518_v38, %v3582_v39  ;;  %v4260_v39 = vld [vmem:[%s5661_s1 + $0xb0] sm:$0xff] }
0x10c4   : > { %v3638_v45 = vrot.slane %v3630_v17, %v4927_v34  ;;  %v3645_v46 = vrot.slane %v3631_v36, %v4927_v34  ;;  %v4259_v17 = vld [vmem:[%s5661_s1 + $0xa0] sm:$0xff]  ;;  %v4258_v36 = vld [vmem:[%s5661_s1 + $0x98] sm:$0xff] }
0x10c7   : > { %v3550_v21 = vpop.trf.xlu1 }
0x10cb   : > { %v3614_v40 = vpop.trf.xlu1 }
0x10cc   : > { %v3646_v41 = vcombine.low %v3550_v21, %v3614_v40  ;;  %v3647_v44 = vcombine.high %v3550_v21, %v3614_v40  ;;  %v4257_v40 = vld [vmem:[%s5661_s1 + $0x88] sm:$0xff] }
0x10ce   : > { %v3654_v42 = vrot.slane %v3646_v41, %v4927_v34  ;;  %v3661_v47 = vrot.slane %v3647_v44, %v4927_v34  ;;  %v4256_v41 = vld [vmem:[%s5661_s1 + $0x80] sm:$0xff]  ;;  %v4255_v44 = vld [vmem:[%s5661_s1 + $0x70] sm:$0xff] }
0x10d0   : > { %v3662_v10 = vcombine.low %v3638_v45, %v3654_v42  ;;  %v3663_v48 = vcombine.high %v3638_v45, %v3654_v42  ;;  %v3678_v49 = vcombine.low %v3645_v46, %v3661_v47  ;;  %v3679_v57 = vcombine.high %v3645_v46, %v3661_v47  ;;  %v4254_v45 = vld [vmem:[%s5661_s1 + $0x68] sm:$0xff]  ;;  %v4293_v46 = vld [vmem:[%s5662_s2 + $0x1f8] sm:$0xff]  ;;  %v4292_v47 = vld [vmem:[%s5662_s2 + $0x1f0] sm:$0xff] }
0x10d1   : > { %v4277_v42 = vld [vmem:[%s5662_s2 + $0x178] sm:$0xff] }
0x10d2   : > { %v3670_v0 = vrot.slane %v3662_v10, %v4938_v43  ;;  %v3677_v50 = vrot.slane %v3663_v48, %v4938_v43  ;;  %v3686_v52 = vrot.slane %v3678_v49, %v4938_v43  ;;  %v3693_v53 = vrot.slane %v3679_v57, %v4938_v43  ;;  %v4276_v10 = vld [vmem:[%s5662_s2 + $0x170] sm:$0xff]  ;;  %v4291_v48 = vld [vmem:[%s5662_s2 + $0x1e8] sm:$0xff]  ;;  %v4290_v57 = vld [vmem:[%s5662_s2 + $0x1e0] sm:$0xff] }
0x10d3   : > { %v4275_v49 = vld [vmem:[%s5662_s2 + $0x168] sm:$0xff] }
0x10d4   : > { %v3698_v54 = vcombine.low %v3670_v0, %v3677_v50  ;;  %v4321_v55 = vcombine.high %v3670_v0, %v3677_v50  ;;  %v3714_v56 = vcombine.low %v3686_v52, %v3693_v53  ;;  %v4322_v7 = vcombine.high %v3686_v52, %v3693_v53  ;;  %v4274_v0 = vld [vmem:[%s5662_s2 + $0x160] sm:$0xff]  ;;  %v4289_v50 = vld [vmem:[%s5662_s2 + $0x1d8] sm:$0xff]  ;;  %v4288_v53 = vld [vmem:[%s5662_s2 + $0x1d0] sm:$0xff] }
0x10d5   : > { %v4273_v52 = vld [vmem:[%s5662_s2 + $0x158] sm:$0xff] }
0x10d6   : > { %v3705_v58 = vrot.slane %v3698_v54, %v4927_v34  ;;  %v3713_v59 = vrot.slane %v4321_v55, %v4927_v34  ;;  %v3721_v11 = vrot.slane %v3714_v56, %v4927_v34  ;;  %v3729_v60 = vrot.slane %v4322_v7, %v4927_v34  ;;  %v4272_v54 = vld [vmem:[%s5662_s2 + $0x150] sm:$0xff]  ;;  %v4287_v55 = vld [vmem:[%s5662_s2 + $0x1c8] sm:$0xff]  ;;  %v4286_v7 = vld [vmem:[%s5662_s2 + $0x1c0] sm:$0xff] }
0x10d7   : > { %v4271_v56 = vld [vmem:[%s5662_s2 + $0x148] sm:$0xff] }
0x10d8   : > { %v3731_v61 = vcombine.high %v3705_v58, %v3713_v59  ;;  %v3747_v63 = vcombine.high %v3721_v11, %v3729_v60  ;;  %v3730_v2 = vcombine.low %v3705_v58, %v3713_v59  ;;  %v3746_v4 = vcombine.low %v3721_v11, %v3729_v60  ;;  %v4270_v58 = vld [vmem:[%s5662_s2 + $0x140] sm:$0xff]  ;;  %v4285_v59 = vld [vmem:[%s5662_s2 + $0x1b8] sm:$0xff]  ;;  %v4284_v60 = vld [vmem:[%s5662_s2 + $0x1b0] sm:$0xff] }
0x10d9   : > { %v4269_v11 = vld [vmem:[%s5662_s2 + $0x138] sm:$0xff] }
0x10da   : > { %v3745_v6 = vrot.slane %v3731_v61, %v4938_v43  ;;  %v3761_v1 = vrot.slane %v3747_v63, %v4938_v43  ;;  %v3738_v12 = vrot.slane %v3730_v2, %v4938_v43  ;;  %v3754_v13 = vrot.slane %v3746_v4, %v4938_v43  ;;  %v4268_v61 = vld [vmem:[%s5662_s2 + $0x130] sm:$0xff]  ;;  %v4283_v63 = vld [vmem:[%s5662_s2 + $0x1a8] sm:$0xff]  ;;  %v4282_v4 = vld [vmem:[%s5662_s2 + $0x1a0] sm:$0xff] }
0x10db   : > { %v4267_v2 = vld [vmem:[%s5662_s2 + $0x128] sm:$0xff] }
0x10dc   : > { %v3765_v14 = vcombine.high %v3745_v6, %v3761_v1  ;;  %v3763_v16 = vcombine.high %v3738_v12, %v3754_v13  ;;  %v3762_v20 = vcombine.low %v3738_v12, %v3754_v13  ;;  %v3764_v24 = vcombine.low %v3745_v6, %v3761_v1  ;;  %v4266_v6 = vld [vmem:[%s5662_s2 + $0x120] sm:$0xff] }
0x10de   : > { %3775 = vrot.lane.b32.xlu0 %v3765_v14, %s5671_s26  ;;  %3767 = vrot.lane.b32.xlu1 %v3763_v16, %s5672_s30  ;;  %s213_s30 = sand.u32 1, %s4742_s19  }
0x10df   : > { %v3790_v34 = vpop.permute.xlu1 %3789  ;;  %s4143_s11 = scalar_lea.sflag [#allocation3], %s213_s30 }
0x10e0   : > { %v3792_v25 = vpop.permute.xlu0 %3791 }
0x10e1   : > { %4573 = vmatpush3.msra.mxu0 %v3792_v25  ;;  %v4264_v25 = vld [vmem:[%s5662_s2 + $0x110] sm:$0xff] }
0x10e2   : > { %3771 = vrot.lane.b32.xlu1 %v3764_v24, %s5673_s6  ;;  %4574 = vmatprep.subr.mxu0 %v4752_v8  ;;  %v4280_v24 = vld [vmem:[%s5662_s2 + $0x190] sm:$0xff]  ;;  %s4219_s6 = sshll.u32 %s213_s30, 3 }
0x10e3   : > { %v3788_v26 = vpop.permute.xlu1 %3787  ;;  %3871 = vrot.lane.b32.xlu0 %v5274_v62, %s4761_s9  ;;  %4575 = vmatpush3.msra.mxu0 %v3790_v34  ;;  %v4265_v34 = vld [vmem:[%s5662_s2 + $0x118] sm:$0xff]  ;;  %s215_s8 = scalar_lea.vmem [#allocation2], %s4219_s6 }
0x10e4   : > { %4576 = vmatprep.subr.mxu0 %v4752_v8 }
0x10e5   : > { %4577 = vmatpush3.msra.mxu0 %v3788_v26  ;;  %v4279_v26 = vld [vmem:[%s5662_s2 + $0x188] sm:$0xff] }
0x10e6   : > { %3785 = vrot.lane.b32.xlu1 %v5262_v9, %s4761_s9  ;;  %4578 = vmatprep.subr.mxu0 %v4752_v8  ;;  %s4156_s9 = sshll.u32 %s215_s8, 4  ;;  %s4157_s9 = int_to_ptr.vmem [resolvable:$true] %s4156_s9 }
0x10e7   : > { %s4690_s12 = scalar_lea.vmem %s4157_s9, 128  ;;  %p4697_p0 = scmp.lt.s32.totalorder %s4157_s9, %s4695_s13 }
0x10e8   : > { %p4691_p11 = scmp.ne.s32.totalorder %s4157_s9, %s4690_s12  ;;  %p4698_p1 = scmp.lt.s32.totalorder %s4696_s22, %s4690_s12 }
0x10ea   : > { %p4692_p12 = pnand %p4691_p11, %p4834_p5  ;;  %p4699_p2 = por %p4698_p1, %p4697_p0 }
0x10ec   : > { %p4693_p13 = pneg %p4692_p12 }
0x10ee   : > { %p4700_p3 = pnand %p4699_p2, %p4693_p13 }
0x1150   : > { %v3768_v43 = vpop.permute.xlu1 %3767  ;;  %v3776_v27 = vpop.permute.xlu0 %3775 }
0x1151   : > { %v3778_v15 = vsel %vm804_vm2, %v3762_v20, %v3768_v43  ;;  %v4281_v20 = vld [vmem:[%s5662_s2 + $0x198] sm:$0xff]  ;;  %v4263_v43 = vld [vmem:[%s5662_s2 + $0x108] sm:$0xff] }
0x1154   : > { %v3772_v3 = vpop.permute.xlu1 %3771 }
0x1155   : > { %v3779_v19 = vsel %vm1862_vm3, %v3778_v15, %v3772_v3  ;;  %v3872_v29 = vpop.permute.xlu0 %3871  ;;  %v4278_v3 = vld [vmem:[%s5662_s2 + $0x180] sm:$0xff] }
0x1156   : > { %v3780_v22 = vsel %vm1864_vm4, %v3779_v19, %v3776_v27  ;;  %v4262_v15 = vld [vmem:[%s5662_s2 + $0x100] sm:$0xff] }
0x1157   : > { %v4295_v19 = vld [vmem:[%s5663_s3 + $0x5] sm:$0x3] }
0x1158   : > { %v3786_v5 = vpop.permute.xlu1 %3785  ;;  %v3892_v27 = vrot.slane %v4295_v19, %v1976_v23  ;;  %v4054_v23 = vld [vmem:[%s5664_s4 + $0x8] sm:$0xff] }
0x1159   : > { %4579 = vmatpush3.msra.mxu0 %v3786_v5  ;;  %v3896_v5 = vrot.slane %v4295_v19, %v1980_v32  ;;  %v4053_v32 = vld [vmem:[%s5664_s4] sm:$0xff] }
0x115a   : > { %4581 = vmatmul.mubr.msk.f32.vlgmr.msra.gmra.mxu0 %vm268_vm0, %v3780_v22  ;;  %4419 = vmatprep.subr.mxu0 %v4293_v46 }
0x115b   : > { %4420 = vmatpush3.msra.mxu0 %v4277_v42 }
0x115c   : > { %4421 = vmatprep.subr.mxu0 %v4292_v47 }
0x115d   : > { %4422 = vmatpush3.msra.mxu0 %v4276_v10 }
0x115e   : > { %4423 = vmatprep.subr.mxu0 %v4291_v48 }
0x115f   : > { %4424 = vmatpush3.msra.mxu0 %v4275_v49 }
0x1160   : > { %4425 = vmatprep.subr.mxu0 %v4290_v57 }
0x1161   : > { %4426 = vmatpush3.msra.mxu0 %v4274_v0 }
0x1162   : > { %4427 = vmatprep.subr.mxu0 %v4289_v50 }
0x1163   : > { %4428 = vmatpush3.msra.mxu0 %v4273_v52 }
0x1164   : > { %4429 = vmatprep.subr.mxu0 %v4288_v53 }
0x1165   : > { %4430 = vmatpush3.msra.mxu0 %v4272_v54 }
0x1166   : > { %4431 = vmatprep.subr.mxu0 %v4287_v55 }
0x1167   : > { %4432 = vmatpush3.msra.mxu0 %v4271_v56 }
0x1168   : > { %4433 = vmatprep.subr.mxu0 %v4286_v7 }
0x1169   : > { %4434 = vmatpush3.msra.mxu0 %v4270_v58 }
0x116a   : > { %4435 = vmatprep.subr.mxu0 %v4285_v59 }
0x116b   : > { %4436 = vmatpush3.msra.mxu0 %v4269_v11 }
0x116c   : > { %4437 = vmatprep.subr.mxu0 %v4284_v60 }
0x116d   : > { %4438 = vmatpush3.msra.mxu0 %v4268_v61 }
0x116e   : > { %4439 = vmatprep.subr.mxu0 %v4283_v63 }
0x116f   : > { %4440 = vmatpush3.msra.mxu0 %v4267_v2 }
0x1170   : > { %4441 = vmatprep.subr.mxu0 %v4282_v4 }
0x1171   : > { %4442 = vmatpush3.msra.mxu0 %v4266_v6 }
0x1172   : > { %4443 = vmatprep.subr.mxu0 %v4281_v20 }
0x1173   : > { %4444 = vmatpush3.msra.mxu0 %v4265_v34 }
0x1174   : > { %4445 = vmatprep.subr.mxu0 %v4280_v24 }
0x1175   : > { %4446 = vmatpush3.msra.mxu0 %v4264_v25 }
0x1176   : > { %4447 = vmatprep.subr.mxu0 %v4279_v26 }
0x1177   : > { %4448 = vmatpush3.msra.mxu0 %v4263_v43 }
0x1178   : > { %4449 = vmatprep.subr.mxu0 %v4278_v3 }
0x1179   : > { %4450 = vmatpush3.msra.mxu0 %v4262_v15 }
0x121a   : > { %v3866_v62 = vpop.f32.mrf.mxu0 }
0x121b   : > { %v3870_v9 = vadd.f32 %v3866_v62, %v5234_v51  ;;  %v4261_v51 = vld [vmem:[%s5661_s1 + $0xb8] sm:$0xff] }
0x121c   : > { %v4582_v30 = vpop.f32.mrf.mxu0  ;;  %3926 = vmatprep.subr.mxu1 %v4261_v51 }
0x121d   : > { %v5454_v31 = vadd.f32 %v3872_v29, %v3870_v9  ;;  %3927 = vmatpush1.msra.mxu1 %v4260_v39 }
0x121e   : > { %3928 = vmatprep.subr.mxu1 %v4259_v17  ;;  %v4326_v17 = vld [vmem:[%s5664_s4 + $0x20] ss:$0 sm:$0xff] }
0x121f   : > { %v3875_v33 = vsel %vm268_vm0, %v5454_v31, 0.0  ;;  %3929 = vmatpush1.msra.mxu1 %v4258_v36 }
0x1220   : > { %3876 = vadd.xlane.f32.xlu1 %v3875_v33  ;;  %3930 = vmatprep.subr.mxu1 %v4257_v40 }
0x1221   : > { %3931 = vmatpush1.msra.mxu1 %v4256_v41 }
0x1222   : > { %3932 = vmatprep.subr.mxu1 %v4255_v44 }
0x1223   : > { %3933 = vmatpush1.msra.mxu1 %v4254_v45 }
0x1224   : > { %4583 = vmatprep.subr.mxu1 %v4752_v8 }
0x12a9   : > { %v3877_v18 = vpop.xlane.xlu1 %3876 }
0x12aa   : > { %v3878_v35 = vmul.f32 0.03125, %v3877_v18  ;;  %v4056_v18 = vld [vmem:[%s5664_s4 + $0x18] sm:$0xff] }
0x12ac   : > { %v5459_v37 = vsub.f32 %v5454_v31, %v3878_v35 }
0x12ae   : > { %v3880_v38 = vmul.f32 %v5459_v37, %v5459_v37 }
0x12b0   : > { %v3881_v21 = vsel %vm268_vm0, %v3880_v38, 0.0 }
0x12b1   : > { %3882 = vadd.xlane.f32.xlu0 %v3881_v21  ;;  %v4325_v21 = vld [vmem:[%s5663_s3 + $0x7] ss:$0 sm:$0xff] }
0x133a   : > { %v3883_v1 = vpop.xlane.xlu0 %3882 }
0x133b   : > { %v3884_v12 = vmul.f32 0.03125, %v3883_v1 }
0x133d   : > { %v3885_v13 = vadd.f32 1e-05, %v3884_v12 }
0x133f   : > { %4684 = vrsqrt.f32 %v3885_v13 }
0x134c   : > { %v4685_v14 = vpop.eup %4684 }
0x134d   : > { %v3887_v16 = vmul.f32 %v4685_v14, %v5459_v37 }
0x134f   : > { %4324 = vmatmul.mubr.msk.f32.vlgmr.msra.gmra.mxu1 %vm268_vm0, %v3887_v16 }
0x1350   : > { %4591 = vmatprep.mubr.msk.f32.mxu1 %vm4753_vm1, %v4752_v8  ;;  %4584 = vmatpush3.msra.mxu1 %v4056_v18 }
0x1351   : > { %4585 = vmatprep.subr.mxu1 %v4752_v8 }
0x1352   : > { %4586 = vmatpush3.msra.mxu1 %v4055_v28 }
0x1353   : > { %4587 = vmatprep.subr.mxu1 %v4752_v8 }
0x1354   : > { %4588 = vmatpush3.msra.mxu1 %v4054_v23 }
0x1355   : > { %4589 = vmatprep.subr.mxu1 %v4752_v8 }
0x1356   : > { %4590 = vmatpush3.msra.mxu1 %v4053_v32 }
0x140f   : > { %v3968_v22 = vpop.f32.mrf.mxu1 }
0x1410   : > { %v3969_v62 = vadd.f32 %v3968_v22, %v3892_v27 }
0x1411   : > { %v3970_v29 = vpop.f32.mrf.mxu1 }
0x1412   : > { %v3971_v9 = vadd.f32 %v3970_v29, %v3896_v5  ;;  %v3973_v33 = vmax.f32 %v3969_v62, 0.0 }
0x1414   : > { %v3974_v30 = vmax.f32 %v3971_v9, 0.0 }
0x1416   : > { %4039 = vmatprep.mubr.f32.mxu0 %v3974_v30 }
0x1417   : > { %4040 = vmatmul.mubr.f32.vlgmr.msra.gmra.mxu0 %v3973_v33 }
0x14d7   : > { %v4451_v35 = vpop.f32.mrf.mxu0 }
0x14d9   : > { %v4452_v37 = vpop.f32.mrf.mxu0 }
0x14da   : > { %v4453_v38 = vadd.f32 %v4452_v37, %v4451_v35 }
0x14dc   : > { %v4045_v51 = vadd.f32 %v4453_v38, %v5454_v31 }
0x14de   : > { %v4052_v39 = vadd.f32 %v4325_v21, %v4045_v51 }
0x14e0   : > { %4592 = vmatmul.mubr.msk.f32.vlgmr.msra.gmra.mxu1 %vm268_vm0, %v4052_v39 }
0x15a0   : > { %v4131_v8 = vpop.f32.mrf.mxu1 }
0x15a1   : > { %v4132_v36 = vadd.f32 %v4326_v17, %v4131_v8 }
0x15a2   : > { %v4593_v40 = vpop.f32.mrf.mxu1 }
0x15a3   : > { %v4135_v41 = vsub.f32 0.0, %v4132_v36 }
0x15a5   : > { %v4136_v44 = vmul.f32 1.442695, %v4135_v41 }
0x15a7   : > { %4686 = vpow2.f32 %v4136_v44 }
0x15b4   : > { %v4687_v45 = vpop.eup %4686 }
0x15b5   : > { %v4138_v46 = vadd.f32 1.0, %v4687_v45 }
0x15b7   : > { %4688 = vrcp.f32 %v4138_v46 }
0x15c4   : > { %v4689_v31 = vpop.eup %4688 }
0x15c5   : > { %4141 = vst.msk [vmem:[%s215_s8] sm:$0xff] %vm1862_vm3, %v4689_v31 }
0x15c6   : > { %4703 = shalt.err (!%p4700_p3)
}
0x15c7   : > { %s4704_s14 = scalar_lea.hbm %s5624_s10, 128  ;;  %s4708_s26 = scalar_lea.hbm %s5665_s5, 512 }
0x15c8   : > { %p4705_p4 = scmp.ne.s32.totalorder %s5624_s10, %s4704_s14  ;;  %p4709_p9 = scmp.lt.s32.totalorder %s5624_s10, %s5665_s5 }
0x15c9   : > { %p4710_p10 = scmp.lt.s32.totalorder %s4708_s26, %s4704_s14 }
0x15ca   : > { %p4706_p7 = pnand %p4705_p4, %p4834_p5 }
0x15cb   : > { %p4711_p11 = por %p4710_p10, %p4709_p9 }
0x15cc   : > { %p4707_p8 = pneg %p4706_p7 }
0x15ce   : > { %p4712_p12 = pnand %p4711_p11, %p4707_p8 }
0x15d0   : > { %4715 = shalt.err (!%p4712_p12)
}
0x15d1   : > { %4594 = dma.vmem_to_hbm [thread:$0]  (%p4834_p5), %s4157_s9, 128, %s5624_s10, %s4143_s11  }
0x15d2 PF: > { %p4600_p13 = scmp.ge.s32.totalorder %s4750_s21, 2  ;;  %s4168_s7 = sand.u32 1, %s4738_s18  }
0x15d3   : > { %s4169_s8 = scalar_lea.sflag [#allocation3], %s4168_s7 }
0x15d4   : > { %p4597_p0 = pnand %p4600_p13, %p4838_p6 }
0x15d6   : > { %p4598_p1 = pneg %p4597_p0 }
0x15d8   : > { %4733 = dma.done.wait (%p4598_p1), %s4169_s8, 128  }
0x15d9   : > { %4735 = vsyncadd (%p4598_p1), %s4169_s8, 4294967168  ;;  %p15_p2 = scmp.ge.s32.totalorder %s4821_s24, 6   ;;  %s5674_s18 = smov %s4742_s19 }
0x15da   : > { %s5675_s19 = smov %s4746_s20  ;;  %s5676_s20 = smov %s4832_s27 }
0x15db   : > { %s5677_s21 = smov %s4821_s24  ;;  %17 = sbr.rel (!%p15_p2) target bundleno = 3 (0x3), region = 78 }
0x15e0   :  { %4174 = vsyncpa [#allocation3], 1 }
0x15e1   :  { %4176 = vsyncpa [#allocation3 + $0x1], 1 }

</bundles_post_ra>
